<compile_context>
chip_gen: v5e
topology: v5e:2x2
jax: 0.10.0
libtpu: 0.0.40
codegen_flags: <defaults>
</compile_context>

<pallas_src>
import jax
import jax.numpy as jnp
from jax.experimental import pallas as pl
from jax.experimental.pallas import tpu as pltpu

HIDDEN = 32        # hidden_size
INPUT_DIM = 64     # embedding vocab (input_dim)
OUTPUT_SIZE = 16   # output_size (logit dim)
SEQ_LEN = 8        # padded sequence length
BATCH = 4          # the four packed sequences: q, e, o, h_q


def gru_decoder_kernel(x_ref, valid_ref, wih_g_ref, bih_g_ref, whh_t_ref,
                       bhh_ref, wout_t_ref, bout_ref,
                       out_ref, hn_ref, gi_ref, hall_ref):
    """GRU recurrence with hoisted input/output projections.

    Gate order follows PyTorch nn.GRU: (r, z, n).
      x_ref    : (T*B, H)   embedded tokens, time-major flattened
      valid_ref: (T*B, 1)   1.0 where the timestep is a real (unpadded) token
      wih_g_ref: (3, H, H)  gate-major, pre-transposed input weights
      whh_t_ref: (H, 3H)    pre-transposed hidden weights
      gi_ref   : (3, T*B, H) VMEM scratch, precomputed input projection
      hall_ref : (T*B, H)    VMEM scratch, per-step hidden states
    """
    TB, H = x_ref.shape
    B, _ = hn_ref.shape
    T = TB // B

    # ---- (1) input projection hoisted off the serial critical path ----------
    # One well-shaped matmul per gate; gate-major so the recurrence indexes gi
    # on a leading dim (no sub-128-lane slicing of gi inside the loop).
    x = x_ref[...]
    for g in range(3):
        gi_ref[g] = (jnp.dot(x, wih_g_ref[g],
                             preferred_element_type=jnp.float32)
                     + bih_g_ref[g])

    # ---- (2) loop-invariant loads / broadcasts hoisted -----------------------
    whh_t = whh_t_ref[...]                               # (H, 3H)
    bhh = jnp.broadcast_to(bhh_ref[...], (B, 3 * H))     # (B, 3H), broadcast once

    # ---- (3) serial recurrence: ONE matmul per step, h carried in registers --
    h = jnp.zeros((B, H), jnp.float32)
    for t in range(T):                                   # T=8, fully unrolled
        lo = t * B
        gh = jnp.dot(h, whh_t, preferred_element_type=jnp.float32) + bhh
        r = jax.nn.sigmoid(gi_ref[0, lo:lo + B, :] + gh[:, 0:H])
        z = jax.nn.sigmoid(gi_ref[1, lo:lo + B, :] + gh[:, H:2 * H])
        n = jnp.tanh(gi_ref[2, lo:lo + B, :] + r * gh[:, 2 * H:3 * H])
        h_new = (1.0 - z) * n + z * h
        # pack_sequence semantics: padded steps carry the hidden state through.
        m = valid_ref[lo:lo + B, :]                      # (B, 1)
        h = m * h_new + (1.0 - m) * h
        hall_ref[lo:lo + B, :] = h

    hn_ref[...] = h                                      # final hidden state h_n

    # ---- (4) output projection hoisted: one matmul + one dense store ---------
    logits = (jnp.dot(hall_ref[...], wout_t_ref[...],
                      preferred_element_type=jnp.float32) + bout_ref[...])
    out_ref[...] = valid_ref[...] * logits               # zero padded rows


def feedback_forward(tokens, lengths, params):
    """tokens: (B, T) int32 ids, lengths: (B,) int32 valid lengths.

    Returns (logits (B, T, O) batch_first, h_n (B, H))."""
    # --- glue: embedding gather + time-major flatten to (T*B, H) ---
    emb = params["embedding"]                                 # (INPUT_DIM, H)
    B, T = tokens.shape
    H = emb.shape[1]
    O = params["b_out"].shape[0]

    x = jnp.take(emb, tokens, axis=0)                         # (B, T, H)
    x2d = jnp.transpose(x, (1, 0, 2)).reshape(T * B, H).astype(jnp.float32)

    # pack_sequence validity as one tiny (T*B, 1) mask (replaces the old
    # materialized (T,B,H)/(T,B,O) masks -> two fewer big HBM->VMEM copies).
    valid = (jnp.arange(T)[:, None] < lengths[None, :]).astype(jnp.float32)
    valid = valid.reshape(T * B, 1)

    # --- glue: parameter reshapes (gate-major / pre-transposed for the kernel) ---
    wih_g = jnp.transpose(params["w_ih"].reshape(3, H, H), (0, 2, 1))  # (3,H,H)
    bih_g = params["b_ih"].reshape(3, 1, H)                            # (3,1,H)
    whh_t = params["w_hh"].T                                           # (H, 3H)
    bhh = params["b_hh"][None, :]                                      # (1, 3H)
    wout_t = params["w_out"].T                                         # (H, O)
    bout = params["b_out"][None, :]                                    # (1, O)

    out2d, h_n = pl.pallas_call(
        gru_decoder_kernel,
        out_shape=(jax.ShapeDtypeStruct((T * B, O), jnp.float32),
                   jax.ShapeDtypeStruct((B, H), jnp.float32)),
        in_specs=[pl.BlockSpec(memory_space=pltpu.MemorySpace.VMEM)] * 8,
        out_specs=(pl.BlockSpec(memory_space=pltpu.MemorySpace.VMEM),
                   pl.BlockSpec(memory_space=pltpu.MemorySpace.VMEM)),
        scratch_shapes=[pltpu.VMEM((3, T * B, H), jnp.float32),   # gi (gate-major)
                        pltpu.VMEM((T * B, H), jnp.float32)],     # per-step h
    )(x2d, valid, wih_g, bih_g, whh_t, bhh, wout_t, bout)

    # back to PyTorch-style batch_first: (B, T, output_size)
    logits = jnp.transpose(out2d.reshape(T, B, O), (1, 0, 2))
    return logits, h_n


if __name__ == "__main__":
    key = jax.random.PRNGKey(0)
    k = jax.random.split(key, 8)

    # Deterministic synthetic parameters (shapes from the module __init__):
    #   Embedding(input_dim, hidden), GRU(hidden, hidden), Linear(hidden, output_size)
    params = {
        "embedding": 0.1 * jax.random.normal(k[0], (INPUT_DIM, HIDDEN), jnp.float32),
        "w_ih": 0.1 * jax.random.normal(k[1], (3 * HIDDEN, HIDDEN), jnp.float32),
        "w_hh": 0.1 * jax.random.normal(k[2], (3 * HIDDEN, HIDDEN), jnp.float32),
        "b_ih": 0.1 * jax.random.normal(k[3], (3 * HIDDEN,), jnp.float32),
        "b_hh": 0.1 * jax.random.normal(k[4], (3 * HIDDEN,), jnp.float32),
        "w_out": 0.1 * jax.random.normal(k[5], (OUTPUT_SIZE, HIDDEN), jnp.float32),
        "b_out": 0.1 * jax.random.normal(k[6], (OUTPUT_SIZE,), jnp.float32),
    }

    # Four token sequences (q, e, o, h_q), padded to SEQ_LEN with true lengths.
    tokens = jax.random.randint(k[7], (BATCH, SEQ_LEN), 0, INPUT_DIM, dtype=jnp.int32)
    lengths = jnp.array([8, 6, 7, 5], dtype=jnp.int32)

    logits, h_n = feedback_forward(tokens, lengths, params)
    jax.block_until_ready((logits, h_n))
    assert logits.shape == (BATCH, SEQ_LEN, OUTPUT_SIZE)
    assert logits.dtype == jnp.float32
    assert h_n.shape == (BATCH, HIDDEN)
    print("KERNEL_OK")
</pallas_src>

<mosaic_0001>
module attributes {stable_mosaic.version = 11 : i64} {
  func.func @gru_decoder_kernel(%arg0: memref<32x32xf32, #tpu.memory_space<vmem>>, %arg1: memref<32x1xf32, #tpu.memory_space<vmem>>, %arg2: memref<3x32x32xf32, #tpu.memory_space<vmem>>, %arg3: memref<3x1x32xf32, #tpu.memory_space<vmem>>, %arg4: memref<32x96xf32, #tpu.memory_space<vmem>>, %arg5: memref<1x96xf32, #tpu.memory_space<vmem>>, %arg6: memref<32x16xf32, #tpu.memory_space<vmem>>, %arg7: memref<1x16xf32, #tpu.memory_space<vmem>>, %arg8: memref<32x16xf32, #tpu.memory_space<vmem>>, %arg9: memref<4x32xf32, #tpu.memory_space<vmem>>, %arg10: memref<3x32x32xf32, #tpu.memory_space<vmem>>, %arg11: memref<32x32xf32, #tpu.memory_space<vmem>>) attributes {dimension_semantics = [], scalar_prefetch = 0 : i64, scratch_operands = 2 : i64, tpu.core_type = #tpu.core_type<tc>} {
    %c0 = arith.constant 0 : index
    %c0_0 = arith.constant 0 : index
    %0 = vector.load %arg0[%c0, %c0_0] : memref<32x32xf32, #tpu.memory_space<vmem>>, vector<32x32xf32>
    %c0_1 = arith.constant 0 : index
    %c0_2 = arith.constant 0 : index
    %c0_3 = arith.constant 0 : index
    %1 = vector.load %arg2[%c0_1, %c0_2, %c0_3] : memref<3x32x32xf32, #tpu.memory_space<vmem>>, vector<1x32x32xf32>
    %2 = vector.shape_cast %1 : vector<1x32x32xf32> to vector<32x32xf32>
    %cst = arith.constant dense<0.000000e+00> : vector<32x32xf32>
    %3 = tpu.matmul %0, %2, %cst {dimension_numbers = #tpu.dot_dimension_numbers<[1], [0], [0], [1], [0, 0, 1, 1], [], []>} : vector<32x32xf32>, vector<32x32xf32>, vector<32x32xf32> -> vector<32x32xf32>
    %c0_4 = arith.constant 0 : index
    %c0_5 = arith.constant 0 : index
    %c0_6 = arith.constant 0 : index
    %4 = vector.load %arg3[%c0_4, %c0_5, %c0_6] : memref<3x1x32xf32, #tpu.memory_space<vmem>>, vector<1x1x32xf32>
    %5 = vector.shape_cast %4 : vector<1x1x32xf32> to vector<1x32xf32>
    %6 = vector.broadcast %5 : vector<1x32xf32> to vector<32x32xf32>
    %7 = arith.addf %3, %6 : vector<32x32xf32>
    %c0_7 = arith.constant 0 : index
    %c0_8 = arith.constant 0 : index
    %c0_9 = arith.constant 0 : index
    %8 = vector.load %arg10[%c0_7, %c0_8, %c0_9] : memref<3x32x32xf32, #tpu.memory_space<vmem>>, vector<1x32x32xf32>
    %9 = vector.shape_cast %8 : vector<1x32x32xf32> to vector<32x32xf32>
    %10 = vector.shape_cast %7 : vector<32x32xf32> to vector<1x32x32xf32>
    tpu.vector_store %arg10[%c0_7, %c0_8, %c0_9], %10 {strides = array<i32>} : memref<3x32x32xf32, #tpu.memory_space<vmem>>, vector<1x32x32xf32>,
    %c1 = arith.constant 1 : index
    %c0_10 = arith.constant 0 : index
    %c0_11 = arith.constant 0 : index
    %11 = vector.load %arg2[%c1, %c0_10, %c0_11] : memref<3x32x32xf32, #tpu.memory_space<vmem>>, vector<1x32x32xf32>
    %12 = vector.shape_cast %11 : vector<1x32x32xf32> to vector<32x32xf32>
    %cst_12 = arith.constant dense<0.000000e+00> : vector<32x32xf32>
    %13 = tpu.matmul %0, %12, %cst_12 {dimension_numbers = #tpu.dot_dimension_numbers<[1], [0], [0], [1], [0, 0, 1, 1], [], []>} : vector<32x32xf32>, vector<32x32xf32>, vector<32x32xf32> -> vector<32x32xf32>
    %c1_13 = arith.constant 1 : index
    %c0_14 = arith.constant 0 : index
    %c0_15 = arith.constant 0 : index
    %14 = vector.load %arg3[%c1_13, %c0_14, %c0_15] : memref<3x1x32xf32, #tpu.memory_space<vmem>>, vector<1x1x32xf32>
    %15 = vector.shape_cast %14 : vector<1x1x32xf32> to vector<1x32xf32>
    %16 = vector.broadcast %15 : vector<1x32xf32> to vector<32x32xf32>
    %17 = arith.addf %13, %16 : vector<32x32xf32>
    %c1_16 = arith.constant 1 : index
    %c0_17 = arith.constant 0 : index
    %c0_18 = arith.constant 0 : index
    %18 = vector.load %arg10[%c1_16, %c0_17, %c0_18] : memref<3x32x32xf32, #tpu.memory_space<vmem>>, vector<1x32x32xf32>
    %19 = vector.shape_cast %18 : vector<1x32x32xf32> to vector<32x32xf32>
    %20 = vector.shape_cast %17 : vector<32x32xf32> to vector<1x32x32xf32>
    tpu.vector_store %arg10[%c1_16, %c0_17, %c0_18], %20 {strides = array<i32>} : memref<3x32x32xf32, #tpu.memory_space<vmem>>, vector<1x32x32xf32>,
    %c2 = arith.constant 2 : index
    %c0_19 = arith.constant 0 : index
    %c0_20 = arith.constant 0 : index
    %21 = vector.load %arg2[%c2, %c0_19, %c0_20] : memref<3x32x32xf32, #tpu.memory_space<vmem>>, vector<1x32x32xf32>
    %22 = vector.shape_cast %21 : vector<1x32x32xf32> to vector<32x32xf32>
    %cst_21 = arith.constant dense<0.000000e+00> : vector<32x32xf32>
    %23 = tpu.matmul %0, %22, %cst_21 {dimension_numbers = #tpu.dot_dimension_numbers<[1], [0], [0], [1], [0, 0, 1, 1], [], []>} : vector<32x32xf32>, vector<32x32xf32>, vector<32x32xf32> -> vector<32x32xf32>
    %c2_22 = arith.constant 2 : index
    %c0_23 = arith.constant 0 : index
    %c0_24 = arith.constant 0 : index
    %24 = vector.load %arg3[%c2_22, %c0_23, %c0_24] : memref<3x1x32xf32, #tpu.memory_space<vmem>>, vector<1x1x32xf32>
    %25 = vector.shape_cast %24 : vector<1x1x32xf32> to vector<1x32xf32>
    %26 = vector.broadcast %25 : vector<1x32xf32> to vector<32x32xf32>
    %27 = arith.addf %23, %26 : vector<32x32xf32>
    %c2_25 = arith.constant 2 : index
    %c0_26 = arith.constant 0 : index
    %c0_27 = arith.constant 0 : index
    %28 = vector.load %arg10[%c2_25, %c0_26, %c0_27] : memref<3x32x32xf32, #tpu.memory_space<vmem>>, vector<1x32x32xf32>
    %29 = vector.shape_cast %28 : vector<1x32x32xf32> to vector<32x32xf32>
    %30 = vector.shape_cast %27 : vector<32x32xf32> to vector<1x32x32xf32>
    tpu.vector_store %arg10[%c2_25, %c0_26, %c0_27], %30 {strides = array<i32>} : memref<3x32x32xf32, #tpu.memory_space<vmem>>, vector<1x32x32xf32>,
    %c0_28 = arith.constant 0 : index
    %c0_29 = arith.constant 0 : index
    %31 = vector.load %arg4[%c0_28, %c0_29] : memref<32x96xf32, #tpu.memory_space<vmem>>, vector<32x96xf32>
    %c0_30 = arith.constant 0 : index
    %c0_31 = arith.constant 0 : index
    %32 = vector.load %arg5[%c0_30, %c0_31] : memref<1x96xf32, #tpu.memory_space<vmem>>, vector<1x96xf32>
    %33 = vector.shape_cast %32 : vector<1x96xf32> to vector<1x96xf32>
    %34 = vector.broadcast %33 : vector<1x96xf32> to vector<4x96xf32>
    %cst_32 = arith.constant 0.000000e+00 : f32
    %35 = vector.broadcast %cst_32 : f32 to vector<4x32xf32>
    %cst_33 = arith.constant dense<0.000000e+00> : vector<4x96xf32>
    %36 = tpu.matmul %35, %31, %cst_33 {dimension_numbers = #tpu.dot_dimension_numbers<[1], [0], [0], [1], [0, 0, 1, 1], [], []>} : vector<4x32xf32>, vector<32x96xf32>, vector<4x96xf32> -> vector<4x96xf32>
    %37 = arith.addf %36, %34 : vector<4x96xf32>
    %c0_34 = arith.constant 0 : index
    %c0_35 = arith.constant 0 : index
    %c0_36 = arith.constant 0 : index
    %38 = vector.load %arg10[%c0_34, %c0_35, %c0_36] : memref<3x32x32xf32, #tpu.memory_space<vmem>>, vector<1x4x32xf32>
    %39 = vector.shape_cast %38 : vector<1x4x32xf32> to vector<4x32xf32>
    %40 = vector.extract_strided_slice %37 {offsets = [0, 0], sizes = [4, 32], strides = [1, 1]} : vector<4x96xf32> to vector<4x32xf32>
    %41 = arith.addf %39, %40 : vector<4x32xf32>
    %42 = arith.negf %41 : vector<4x32xf32>
    %43 = math.exp %42 : vector<4x32xf32>
    %cst_37 = arith.constant 1.000000e+00 : f32
    %44 = vector.broadcast %cst_37 : f32 to vector<4x32xf32>
    %45 = arith.addf %44, %43 : vector<4x32xf32>
    %46 = arith.divf %44, %45 : vector<4x32xf32>
    %c1_38 = arith.constant 1 : index
    %c0_39 = arith.constant 0 : index
    %c0_40 = arith.constant 0 : index
    %47 = vector.load %arg10[%c1_38, %c0_39, %c0_40] : memref<3x32x32xf32, #tpu.memory_space<vmem>>, vector<1x4x32xf32>
    %48 = vector.shape_cast %47 : vector<1x4x32xf32> to vector<4x32xf32>
    %49 = vector.extract_strided_slice %37 {offsets = [0, 32], sizes = [4, 32], strides = [1, 1]} : vector<4x96xf32> to vector<4x32xf32>
    %50 = arith.addf %48, %49 : vector<4x32xf32>
    %51 = arith.negf %50 : vector<4x32xf32>
    %52 = math.exp %51 : vector<4x32xf32>
    %cst_41 = arith.constant 1.000000e+00 : f32
    %53 = vector.broadcast %cst_41 : f32 to vector<4x32xf32>
    %54 = arith.addf %53, %52 : vector<4x32xf32>
    %55 = arith.divf %53, %54 : vector<4x32xf32>
    %c2_42 = arith.constant 2 : index
    %c0_43 = arith.constant 0 : index
    %c0_44 = arith.constant 0 : index
    %56 = vector.load %arg10[%c2_42, %c0_43, %c0_44] : memref<3x32x32xf32, #tpu.memory_space<vmem>>, vector<1x4x32xf32>
    %57 = vector.shape_cast %56 : vector<1x4x32xf32> to vector<4x32xf32>
    %58 = vector.extract_strided_slice %37 {offsets = [0, 64], sizes = [4, 32], strides = [1, 1]} : vector<4x96xf32> to vector<4x32xf32>
    %59 = arith.mulf %46, %58 : vector<4x32xf32>
    %60 = arith.addf %57, %59 : vector<4x32xf32>
    %61 = math.tanh %60 : vector<4x32xf32>
    %cst_45 = arith.constant 1.000000e+00 : f32
    %62 = vector.broadcast %cst_45 : f32 to vector<4x32xf32>
    %63 = arith.subf %62, %55 : vector<4x32xf32>
    %64 = arith.mulf %63, %61 : vector<4x32xf32>
    %65 = arith.mulf %55, %35 : vector<4x32xf32>
    %66 = arith.addf %64, %65 : vector<4x32xf32>
    %c0_46 = arith.constant 0 : index
    %c0_47 = arith.constant 0 : index
    %67 = vector.load %arg1[%c0_46, %c0_47] : memref<32x1xf32, #tpu.memory_space<vmem>>, vector<4x1xf32>
    %68 = vector.broadcast %67 : vector<4x1xf32> to vector<4x32xf32>
    %69 = arith.mulf %68, %66 : vector<4x32xf32>
    %cst_48 = arith.constant 1.000000e+00 : f32
    %70 = vector.broadcast %cst_48 : f32 to vector<4x1xf32>
    %71 = arith.subf %70, %67 : vector<4x1xf32>
    %72 = vector.broadcast %71 : vector<4x1xf32> to vector<4x32xf32>
    %73 = arith.mulf %72, %35 : vector<4x32xf32>
    %74 = arith.addf %69, %73 : vector<4x32xf32>
    %c0_49 = arith.constant 0 : index
    %c0_50 = arith.constant 0 : index
    %75 = vector.load %arg11[%c0_49, %c0_50] : memref<32x32xf32, #tpu.memory_space<vmem>>, vector<4x32xf32>
    tpu.vector_store %arg11[%c0_49, %c0_50], %74 {strides = array<i32>} : memref<32x32xf32, #tpu.memory_space<vmem>>, vector<4x32xf32>,
    %cst_51 = arith.constant dense<0.000000e+00> : vector<4x96xf32>
    %76 = tpu.matmul %74, %31, %cst_51 {dimension_numbers = #tpu.dot_dimension_numbers<[1], [0], [0], [1], [0, 0, 1, 1], [], []>} : vector<4x32xf32>, vector<32x96xf32>, vector<4x96xf32> -> vector<4x96xf32>
    %77 = arith.addf %76, %34 : vector<4x96xf32>
    %c0_52 = arith.constant 0 : index
    %c4 = arith.constant 4 : index
    %c0_53 = arith.constant 0 : index
    %78 = vector.load %arg10[%c0_52, %c4, %c0_53] : memref<3x32x32xf32, #tpu.memory_space<vmem>>, vector<1x4x32xf32>
    %79 = vector.shape_cast %78 : vector<1x4x32xf32> to vector<4x32xf32>
    %80 = vector.extract_strided_slice %77 {offsets = [0, 0], sizes = [4, 32], strides = [1, 1]} : vector<4x96xf32> to vector<4x32xf32>
    %81 = arith.addf %79, %80 : vector<4x32xf32>
    %82 = arith.negf %81 : vector<4x32xf32>
    %83 = math.exp %82 : vector<4x32xf32>
    %cst_54 = arith.constant 1.000000e+00 : f32
    %84 = vector.broadcast %cst_54 : f32 to vector<4x32xf32>
    %85 = arith.addf %84, %83 : vector<4x32xf32>
    %86 = arith.divf %84, %85 : vector<4x32xf32>
    %c1_55 = arith.constant 1 : index
    %c4_56 = arith.constant 4 : index
    %c0_57 = arith.constant 0 : index
    %87 = vector.load %arg10[%c1_55, %c4_56, %c0_57] : memref<3x32x32xf32, #tpu.memory_space<vmem>>, vector<1x4x32xf32>
    %88 = vector.shape_cast %87 : vector<1x4x32xf32> to vector<4x32xf32>
    %89 = vector.extract_strided_slice %77 {offsets = [0, 32], sizes = [4, 32], strides = [1, 1]} : vector<4x96xf32> to vector<4x32xf32>
    %90 = arith.addf %88, %89 : vector<4x32xf32>
    %91 = arith.negf %90 : vector<4x32xf32>
    %92 = math.exp %91 : vector<4x32xf32>
    %cst_58 = arith.constant 1.000000e+00 : f32
    %93 = vector.broadcast %cst_58 : f32 to vector<4x32xf32>
    %94 = arith.addf %93, %92 : vector<4x32xf32>
    %95 = arith.divf %93, %94 : vector<4x32xf32>
    %c2_59 = arith.constant 2 : index
    %c4_60 = arith.constant 4 : index
    %c0_61 = arith.constant 0 : index
    %96 = vector.load %arg10[%c2_59, %c4_60, %c0_61] : memref<3x32x32xf32, #tpu.memory_space<vmem>>, vector<1x4x32xf32>
    %97 = vector.shape_cast %96 : vector<1x4x32xf32> to vector<4x32xf32>
    %98 = vector.extract_strided_slice %77 {offsets = [0, 64], sizes = [4, 32], strides = [1, 1]} : vector<4x96xf32> to vector<4x32xf32>
    %99 = arith.mulf %86, %98 : vector<4x32xf32>
    %100 = arith.addf %97, %99 : vector<4x32xf32>
    %101 = math.tanh %100 : vector<4x32xf32>
    %cst_62 = arith.constant 1.000000e+00 : f32
    %102 = vector.broadcast %cst_62 : f32 to vector<4x32xf32>
    %103 = arith.subf %102, %95 : vector<4x32xf32>
    %104 = arith.mulf %103, %101 : vector<4x32xf32>
    %105 = arith.mulf %95, %74 : vector<4x32xf32>
    %106 = arith.addf %104, %105 : vector<4x32xf32>
    %c4_63 = arith.constant 4 : index
    %c0_64 = arith.constant 0 : index
    %107 = vector.load %arg1[%c4_63, %c0_64] : memref<32x1xf32, #tpu.memory_space<vmem>>, vector<4x1xf32>
    %108 = vector.broadcast %107 : vector<4x1xf32> to vector<4x32xf32>
    %109 = arith.mulf %108, %106 : vector<4x32xf32>
    %cst_65 = arith.constant 1.000000e+00 : f32
    %110 = vector.broadcast %cst_65 : f32 to vector<4x1xf32>
    %111 = arith.subf %110, %107 : vector<4x1xf32>
    %112 = vector.broadcast %111 : vector<4x1xf32> to vector<4x32xf32>
    %113 = arith.mulf %112, %74 : vector<4x32xf32>
    %114 = arith.addf %109, %113 : vector<4x32xf32>
    %c4_66 = arith.constant 4 : index
    %c0_67 = arith.constant 0 : index
    %115 = vector.load %arg11[%c4_66, %c0_67] : memref<32x32xf32, #tpu.memory_space<vmem>>, vector<4x32xf32>
    tpu.vector_store %arg11[%c4_66, %c0_67], %114 {strides = array<i32>} : memref<32x32xf32, #tpu.memory_space<vmem>>, vector<4x32xf32>,
    %cst_68 = arith.constant dense<0.000000e+00> : vector<4x96xf32>
    %116 = tpu.matmul %114, %31, %cst_68 {dimension_numbers = #tpu.dot_dimension_numbers<[1], [0], [0], [1], [0, 0, 1, 1], [], []>} : vector<4x32xf32>, vector<32x96xf32>, vector<4x96xf32> -> vector<4x96xf32>
    %117 = arith.addf %116, %34 : vector<4x96xf32>
    %c0_69 = arith.constant 0 : index
    %c8 = arith.constant 8 : index
    %c0_70 = arith.constant 0 : index
    %118 = vector.load %arg10[%c0_69, %c8, %c0_70] : memref<3x32x32xf32, #tpu.memory_space<vmem>>, vector<1x4x32xf32>
    %119 = vector.shape_cast %118 : vector<1x4x32xf32> to vector<4x32xf32>
    %120 = vector.extract_strided_slice %117 {offsets = [0, 0], sizes = [4, 32], strides = [1, 1]} : vector<4x96xf32> to vector<4x32xf32>
    %121 = arith.addf %119, %120 : vector<4x32xf32>
    %122 = arith.negf %121 : vector<4x32xf32>
    %123 = math.exp %122 : vector<4x32xf32>
    %cst_71 = arith.constant 1.000000e+00 : f32
    %124 = vector.broadcast %cst_71 : f32 to vector<4x32xf32>
    %125 = arith.addf %124, %123 : vector<4x32xf32>
    %126 = arith.divf %124, %125 : vector<4x32xf32>
    %c1_72 = arith.constant 1 : index
    %c8_73 = arith.constant 8 : index
    %c0_74 = arith.constant 0 : index
    %127 = vector.load %arg10[%c1_72, %c8_73, %c0_74] : memref<3x32x32xf32, #tpu.memory_space<vmem>>, vector<1x4x32xf32>
    %128 = vector.shape_cast %127 : vector<1x4x32xf32> to vector<4x32xf32>
    %129 = vector.extract_strided_slice %117 {offsets = [0, 32], sizes = [4, 32], strides = [1, 1]} : vector<4x96xf32> to vector<4x32xf32>
    %130 = arith.addf %128, %129 : vector<4x32xf32>
    %131 = arith.negf %130 : vector<4x32xf32>
    %132 = math.exp %131 : vector<4x32xf32>
    %cst_75 = arith.constant 1.000000e+00 : f32
    %133 = vector.broadcast %cst_75 : f32 to vector<4x32xf32>
    %134 = arith.addf %133, %132 : vector<4x32xf32>
    %135 = arith.divf %133, %134 : vector<4x32xf32>
    %c2_76 = arith.constant 2 : index
    %c8_77 = arith.constant 8 : index
    %c0_78 = arith.constant 0 : index
    %136 = vector.load %arg10[%c2_76, %c8_77, %c0_78] : memref<3x32x32xf32, #tpu.memory_space<vmem>>, vector<1x4x32xf32>
    %137 = vector.shape_cast %136 : vector<1x4x32xf32> to vector<4x32xf32>
    %138 = vector.extract_strided_slice %117 {offsets = [0, 64], sizes = [4, 32], strides = [1, 1]} : vector<4x96xf32> to vector<4x32xf32>
    %139 = arith.mulf %126, %138 : vector<4x32xf32>
    %140 = arith.addf %137, %139 : vector<4x32xf32>
    %141 = math.tanh %140 : vector<4x32xf32>
    %cst_79 = arith.constant 1.000000e+00 : f32
    %142 = vector.broadcast %cst_79 : f32 to vector<4x32xf32>
    %143 = arith.subf %142, %135 : vector<4x32xf32>
    %144 = arith.mulf %143, %141 : vector<4x32xf32>
    %145 = arith.mulf %135, %114 : vector<4x32xf32>
    %146 = arith.addf %144, %145 : vector<4x32xf32>
    %c8_80 = arith.constant 8 : index
    %c0_81 = arith.constant 0 : index
    %147 = vector.load %arg1[%c8_80, %c0_81] : memref<32x1xf32, #tpu.memory_space<vmem>>, vector<4x1xf32>
    %148 = vector.broadcast %147 : vector<4x1xf32> to vector<4x32xf32>
    %149 = arith.mulf %148, %146 : vector<4x32xf32>
    %cst_82 = arith.constant 1.000000e+00 : f32
    %150 = vector.broadcast %cst_82 : f32 to vector<4x1xf32>
    %151 = arith.subf %150, %147 : vector<4x1xf32>
    %152 = vector.broadcast %151 : vector<4x1xf32> to vector<4x32xf32>
    %153 = arith.mulf %152, %114 : vector<4x32xf32>
    %154 = arith.addf %149, %153 : vector<4x32xf32>
    %c8_83 = arith.constant 8 : index
    %c0_84 = arith.constant 0 : index
    %155 = vector.load %arg11[%c8_83, %c0_84] : memref<32x32xf32, #tpu.memory_space<vmem>>, vector<4x32xf32>
    tpu.vector_store %arg11[%c8_83, %c0_84], %154 {strides = array<i32>} : memref<32x32xf32, #tpu.memory_space<vmem>>, vector<4x32xf32>,
    %cst_85 = arith.constant dense<0.000000e+00> : vector<4x96xf32>
    %156 = tpu.matmul %154, %31, %cst_85 {dimension_numbers = #tpu.dot_dimension_numbers<[1], [0], [0], [1], [0, 0, 1, 1], [], []>} : vector<4x32xf32>, vector<32x96xf32>, vector<4x96xf32> -> vector<4x96xf32>
    %157 = arith.addf %156, %34 : vector<4x96xf32>
    %c0_86 = arith.constant 0 : index
    %c12 = arith.constant 12 : index
    %c0_87 = arith.constant 0 : index
    %158 = vector.load %arg10[%c0_86, %c12, %c0_87] : memref<3x32x32xf32, #tpu.memory_space<vmem>>, vector<1x4x32xf32>
    %159 = vector.shape_cast %158 : vector<1x4x32xf32> to vector<4x32xf32>
    %160 = vector.extract_strided_slice %157 {offsets = [0, 0], sizes = [4, 32], strides = [1, 1]} : vector<4x96xf32> to vector<4x32xf32>
    %161 = arith.addf %159, %160 : vector<4x32xf32>
    %162 = arith.negf %161 : vector<4x32xf32>
    %163 = math.exp %162 : vector<4x32xf32>
    %cst_88 = arith.constant 1.000000e+00 : f32
    %164 = vector.broadcast %cst_88 : f32 to vector<4x32xf32>
    %165 = arith.addf %164, %163 : vector<4x32xf32>
    %166 = arith.divf %164, %165 : vector<4x32xf32>
    %c1_89 = arith.constant 1 : index
    %c12_90 = arith.constant 12 : index
    %c0_91 = arith.constant 0 : index
    %167 = vector.load %arg10[%c1_89, %c12_90, %c0_91] : memref<3x32x32xf32, #tpu.memory_space<vmem>>, vector<1x4x32xf32>
    %168 = vector.shape_cast %167 : vector<1x4x32xf32> to vector<4x32xf32>
    %169 = vector.extract_strided_slice %157 {offsets = [0, 32], sizes = [4, 32], strides = [1, 1]} : vector<4x96xf32> to vector<4x32xf32>
    %170 = arith.addf %168, %169 : vector<4x32xf32>
    %171 = arith.negf %170 : vector<4x32xf32>
    %172 = math.exp %171 : vector<4x32xf32>
    %cst_92 = arith.constant 1.000000e+00 : f32
    %173 = vector.broadcast %cst_92 : f32 to vector<4x32xf32>
    %174 = arith.addf %173, %172 : vector<4x32xf32>
    %175 = arith.divf %173, %174 : vector<4x32xf32>
    %c2_93 = arith.constant 2 : index
    %c12_94 = arith.constant 12 : index
    %c0_95 = arith.constant 0 : index
    %176 = vector.load %arg10[%c2_93, %c12_94, %c0_95] : memref<3x32x32xf32, #tpu.memory_space<vmem>>, vector<1x4x32xf32>
    %177 = vector.shape_cast %176 : vector<1x4x32xf32> to vector<4x32xf32>
    %178 = vector.extract_strided_slice %157 {offsets = [0, 64], sizes = [4, 32], strides = [1, 1]} : vector<4x96xf32> to vector<4x32xf32>
    %179 = arith.mulf %166, %178 : vector<4x32xf32>
    %180 = arith.addf %177, %179 : vector<4x32xf32>
    %181 = math.tanh %180 : vector<4x32xf32>
    %cst_96 = arith.constant 1.000000e+00 : f32
    %182 = vector.broadcast %cst_96 : f32 to vector<4x32xf32>
    %183 = arith.subf %182, %175 : vector<4x32xf32>
    %184 = arith.mulf %183, %181 : vector<4x32xf32>
    %185 = arith.mulf %175, %154 : vector<4x32xf32>
    %186 = arith.addf %184, %185 : vector<4x32xf32>
    %c12_97 = arith.constant 12 : index
    %c0_98 = arith.constant 0 : index
    %187 = vector.load %arg1[%c12_97, %c0_98] : memref<32x1xf32, #tpu.memory_space<vmem>>, vector<4x1xf32>
    %188 = vector.broadcast %187 : vector<4x1xf32> to vector<4x32xf32>
    %189 = arith.mulf %188, %186 : vector<4x32xf32>
    %cst_99 = arith.constant 1.000000e+00 : f32
    %190 = vector.broadcast %cst_99 : f32 to vector<4x1xf32>
    %191 = arith.subf %190, %187 : vector<4x1xf32>
    %192 = vector.broadcast %191 : vector<4x1xf32> to vector<4x32xf32>
    %193 = arith.mulf %192, %154 : vector<4x32xf32>
    %194 = arith.addf %189, %193 : vector<4x32xf32>
    %c12_100 = arith.constant 12 : index
    %c0_101 = arith.constant 0 : index
    %195 = vector.load %arg11[%c12_100, %c0_101] : memref<32x32xf32, #tpu.memory_space<vmem>>, vector<4x32xf32>
    tpu.vector_store %arg11[%c12_100, %c0_101], %194 {strides = array<i32>} : memref<32x32xf32, #tpu.memory_space<vmem>>, vector<4x32xf32>,
    %cst_102 = arith.constant dense<0.000000e+00> : vector<4x96xf32>
    %196 = tpu.matmul %194, %31, %cst_102 {dimension_numbers = #tpu.dot_dimension_numbers<[1], [0], [0], [1], [0, 0, 1, 1], [], []>} : vector<4x32xf32>, vector<32x96xf32>, vector<4x96xf32> -> vector<4x96xf32>
    %197 = arith.addf %196, %34 : vector<4x96xf32>
    %c0_103 = arith.constant 0 : index
    %c16 = arith.constant 16 : index
    %c0_104 = arith.constant 0 : index
    %198 = vector.load %arg10[%c0_103, %c16, %c0_104] : memref<3x32x32xf32, #tpu.memory_space<vmem>>, vector<1x4x32xf32>
    %199 = vector.shape_cast %198 : vector<1x4x32xf32> to vector<4x32xf32>
    %200 = vector.extract_strided_slice %197 {offsets = [0, 0], sizes = [4, 32], strides = [1, 1]} : vector<4x96xf32> to vector<4x32xf32>
    %201 = arith.addf %199, %200 : vector<4x32xf32>
    %202 = arith.negf %201 : vector<4x32xf32>
    %203 = math.exp %202 : vector<4x32xf32>
    %cst_105 = arith.constant 1.000000e+00 : f32
    %204 = vector.broadcast %cst_105 : f32 to vector<4x32xf32>
    %205 = arith.addf %204, %203 : vector<4x32xf32>
    %206 = arith.divf %204, %205 : vector<4x32xf32>
    %c1_106 = arith.constant 1 : index
    %c16_107 = arith.constant 16 : index
    %c0_108 = arith.constant 0 : index
    %207 = vector.load %arg10[%c1_106, %c16_107, %c0_108] : memref<3x32x32xf32, #tpu.memory_space<vmem>>, vector<1x4x32xf32>
    %208 = vector.shape_cast %207 : vector<1x4x32xf32> to vector<4x32xf32>
    %209 = vector.extract_strided_slice %197 {offsets = [0, 32], sizes = [4, 32], strides = [1, 1]} : vector<4x96xf32> to vector<4x32xf32>
    %210 = arith.addf %208, %209 : vector<4x32xf32>
    %211 = arith.negf %210 : vector<4x32xf32>
    %212 = math.exp %211 : vector<4x32xf32>
    %cst_109 = arith.constant 1.000000e+00 : f32
    %213 = vector.broadcast %cst_109 : f32 to vector<4x32xf32>
    %214 = arith.addf %213, %212 : vector<4x32xf32>
    %215 = arith.divf %213, %214 : vector<4x32xf32>
    %c2_110 = arith.constant 2 : index
    %c16_111 = arith.constant 16 : index
    %c0_112 = arith.constant 0 : index
    %216 = vector.load %arg10[%c2_110, %c16_111, %c0_112] : memref<3x32x32xf32, #tpu.memory_space<vmem>>, vector<1x4x32xf32>
    %217 = vector.shape_cast %216 : vector<1x4x32xf32> to vector<4x32xf32>
    %218 = vector.extract_strided_slice %197 {offsets = [0, 64], sizes = [4, 32], strides = [1, 1]} : vector<4x96xf32> to vector<4x32xf32>
    %219 = arith.mulf %206, %218 : vector<4x32xf32>
    %220 = arith.addf %217, %219 : vector<4x32xf32>
    %221 = math.tanh %220 : vector<4x32xf32>
    %cst_113 = arith.constant 1.000000e+00 : f32
    %222 = vector.broadcast %cst_113 : f32 to vector<4x32xf32>
    %223 = arith.subf %222, %215 : vector<4x32xf32>
    %224 = arith.mulf %223, %221 : vector<4x32xf32>
    %225 = arith.mulf %215, %194 : vector<4x32xf32>
    %226 = arith.addf %224, %225 : vector<4x32xf32>
    %c16_114 = arith.constant 16 : index
    %c0_115 = arith.constant 0 : index
    %227 = vector.load %arg1[%c16_114, %c0_115] : memref<32x1xf32, #tpu.memory_space<vmem>>, vector<4x1xf32>
    %228 = vector.broadcast %227 : vector<4x1xf32> to vector<4x32xf32>
    %229 = arith.mulf %228, %226 : vector<4x32xf32>
    %cst_116 = arith.constant 1.000000e+00 : f32
    %230 = vector.broadcast %cst_116 : f32 to vector<4x1xf32>
    %231 = arith.subf %230, %227 : vector<4x1xf32>
    %232 = vector.broadcast %231 : vector<4x1xf32> to vector<4x32xf32>
    %233 = arith.mulf %232, %194 : vector<4x32xf32>
    %234 = arith.addf %229, %233 : vector<4x32xf32>
    %c16_117 = arith.constant 16 : index
    %c0_118 = arith.constant 0 : index
    %235 = vector.load %arg11[%c16_117, %c0_118] : memref<32x32xf32, #tpu.memory_space<vmem>>, vector<4x32xf32>
    tpu.vector_store %arg11[%c16_117, %c0_118], %234 {strides = array<i32>} : memref<32x32xf32, #tpu.memory_space<vmem>>, vector<4x32xf32>,
    %cst_119 = arith.constant dense<0.000000e+00> : vector<4x96xf32>
    %236 = tpu.matmul %234, %31, %cst_119 {dimension_numbers = #tpu.dot_dimension_numbers<[1], [0], [0], [1], [0, 0, 1, 1], [], []>} : vector<4x32xf32>, vector<32x96xf32>, vector<4x96xf32> -> vector<4x96xf32>
    %237 = arith.addf %236, %34 : vector<4x96xf32>
    %c0_120 = arith.constant 0 : index
    %c20 = arith.constant 20 : index
    %c0_121 = arith.constant 0 : index
    %238 = vector.load %arg10[%c0_120, %c20, %c0_121] : memref<3x32x32xf32, #tpu.memory_space<vmem>>, vector<1x4x32xf32>
    %239 = vector.shape_cast %238 : vector<1x4x32xf32> to vector<4x32xf32>
    %240 = vector.extract_strided_slice %237 {offsets = [0, 0], sizes = [4, 32], strides = [1, 1]} : vector<4x96xf32> to vector<4x32xf32>
    %241 = arith.addf %239, %240 : vector<4x32xf32>
    %242 = arith.negf %241 : vector<4x32xf32>
    %243 = math.exp %242 : vector<4x32xf32>
    %cst_122 = arith.constant 1.000000e+00 : f32
    %244 = vector.broadcast %cst_122 : f32 to vector<4x32xf32>
    %245 = arith.addf %244, %243 : vector<4x32xf32>
    %246 = arith.divf %244, %245 : vector<4x32xf32>
    %c1_123 = arith.constant 1 : index
    %c20_124 = arith.constant 20 : index
    %c0_125 = arith.constant 0 : index
    %247 = vector.load %arg10[%c1_123, %c20_124, %c0_125] : memref<3x32x32xf32, #tpu.memory_space<vmem>>, vector<1x4x32xf32>
    %248 = vector.shape_cast %247 : vector<1x4x32xf32> to vector<4x32xf32>
    %249 = vector.extract_strided_slice %237 {offsets = [0, 32], sizes = [4, 32], strides = [1, 1]} : vector<4x96xf32> to vector<4x32xf32>
    %250 = arith.addf %248, %249 : vector<4x32xf32>
    %251 = arith.negf %250 : vector<4x32xf32>
    %252 = math.exp %251 : vector<4x32xf32>
    %cst_126 = arith.constant 1.000000e+00 : f32
    %253 = vector.broadcast %cst_126 : f32 to vector<4x32xf32>
    %254 = arith.addf %253, %252 : vector<4x32xf32>
    %255 = arith.divf %253, %254 : vector<4x32xf32>
    %c2_127 = arith.constant 2 : index
    %c20_128 = arith.constant 20 : index
    %c0_129 = arith.constant 0 : index
    %256 = vector.load %arg10[%c2_127, %c20_128, %c0_129] : memref<3x32x32xf32, #tpu.memory_space<vmem>>, vector<1x4x32xf32>
    %257 = vector.shape_cast %256 : vector<1x4x32xf32> to vector<4x32xf32>
    %258 = vector.extract_strided_slice %237 {offsets = [0, 64], sizes = [4, 32], strides = [1, 1]} : vector<4x96xf32> to vector<4x32xf32>
    %259 = arith.mulf %246, %258 : vector<4x32xf32>
    %260 = arith.addf %257, %259 : vector<4x32xf32>
    %261 = math.tanh %260 : vector<4x32xf32>
    %cst_130 = arith.constant 1.000000e+00 : f32
    %262 = vector.broadcast %cst_130 : f32 to vector<4x32xf32>
    %263 = arith.subf %262, %255 : vector<4x32xf32>
    %264 = arith.mulf %263, %261 : vector<4x32xf32>
    %265 = arith.mulf %255, %234 : vector<4x32xf32>
    %266 = arith.addf %264, %265 : vector<4x32xf32>
    %c20_131 = arith.constant 20 : index
    %c0_132 = arith.constant 0 : index
    %267 = vector.load %arg1[%c20_131, %c0_132] : memref<32x1xf32, #tpu.memory_space<vmem>>, vector<4x1xf32>
    %268 = vector.broadcast %267 : vector<4x1xf32> to vector<4x32xf32>
    %269 = arith.mulf %268, %266 : vector<4x32xf32>
    %cst_133 = arith.constant 1.000000e+00 : f32
    %270 = vector.broadcast %cst_133 : f32 to vector<4x1xf32>
    %271 = arith.subf %270, %267 : vector<4x1xf32>
    %272 = vector.broadcast %271 : vector<4x1xf32> to vector<4x32xf32>
    %273 = arith.mulf %272, %234 : vector<4x32xf32>
    %274 = arith.addf %269, %273 : vector<4x32xf32>
    %c20_134 = arith.constant 20 : index
    %c0_135 = arith.constant 0 : index
    %275 = vector.load %arg11[%c20_134, %c0_135] : memref<32x32xf32, #tpu.memory_space<vmem>>, vector<4x32xf32>
    tpu.vector_store %arg11[%c20_134, %c0_135], %274 {strides = array<i32>} : memref<32x32xf32, #tpu.memory_space<vmem>>, vector<4x32xf32>,
    %cst_136 = arith.constant dense<0.000000e+00> : vector<4x96xf32>
    %276 = tpu.matmul %274, %31, %cst_136 {dimension_numbers = #tpu.dot_dimension_numbers<[1], [0], [0], [1], [0, 0, 1, 1], [], []>} : vector<4x32xf32>, vector<32x96xf32>, vector<4x96xf32> -> vector<4x96xf32>
    %277 = arith.addf %276, %34 : vector<4x96xf32>
    %c0_137 = arith.constant 0 : index
    %c24 = arith.constant 24 : index
    %c0_138 = arith.constant 0 : index
    %278 = vector.load %arg10[%c0_137, %c24, %c0_138] : memref<3x32x32xf32, #tpu.memory_space<vmem>>, vector<1x4x32xf32>
    %279 = vector.shape_cast %278 : vector<1x4x32xf32> to vector<4x32xf32>
    %280 = vector.extract_strided_slice %277 {offsets = [0, 0], sizes = [4, 32], strides = [1, 1]} : vector<4x96xf32> to vector<4x32xf32>
    %281 = arith.addf %279, %280 : vector<4x32xf32>
    %282 = arith.negf %281 : vector<4x32xf32>
    %283 = math.exp %282 : vector<4x32xf32>
    %cst_139 = arith.constant 1.000000e+00 : f32
    %284 = vector.broadcast %cst_139 : f32 to vector<4x32xf32>
    %285 = arith.addf %284, %283 : vector<4x32xf32>
    %286 = arith.divf %284, %285 : vector<4x32xf32>
    %c1_140 = arith.constant 1 : index
    %c24_141 = arith.constant 24 : index
    %c0_142 = arith.constant 0 : index
    %287 = vector.load %arg10[%c1_140, %c24_141, %c0_142] : memref<3x32x32xf32, #tpu.memory_space<vmem>>, vector<1x4x32xf32>
    %288 = vector.shape_cast %287 : vector<1x4x32xf32> to vector<4x32xf32>
    %289 = vector.extract_strided_slice %277 {offsets = [0, 32], sizes = [4, 32], strides = [1, 1]} : vector<4x96xf32> to vector<4x32xf32>
    %290 = arith.addf %288, %289 : vector<4x32xf32>
    %291 = arith.negf %290 : vector<4x32xf32>
    %292 = math.exp %291 : vector<4x32xf32>
    %cst_143 = arith.constant 1.000000e+00 : f32
    %293 = vector.broadcast %cst_143 : f32 to vector<4x32xf32>
    %294 = arith.addf %293, %292 : vector<4x32xf32>
    %295 = arith.divf %293, %294 : vector<4x32xf32>
    %c2_144 = arith.constant 2 : index
    %c24_145 = arith.constant 24 : index
    %c0_146 = arith.constant 0 : index
    %296 = vector.load %arg10[%c2_144, %c24_145, %c0_146] : memref<3x32x32xf32, #tpu.memory_space<vmem>>, vector<1x4x32xf32>
    %297 = vector.shape_cast %296 : vector<1x4x32xf32> to vector<4x32xf32>
    %298 = vector.extract_strided_slice %277 {offsets = [0, 64], sizes = [4, 32], strides = [1, 1]} : vector<4x96xf32> to vector<4x32xf32>
    %299 = arith.mulf %286, %298 : vector<4x32xf32>
    %300 = arith.addf %297, %299 : vector<4x32xf32>
    %301 = math.tanh %300 : vector<4x32xf32>
    %cst_147 = arith.constant 1.000000e+00 : f32
    %302 = vector.broadcast %cst_147 : f32 to vector<4x32xf32>
    %303 = arith.subf %302, %295 : vector<4x32xf32>
    %304 = arith.mulf %303, %301 : vector<4x32xf32>
    %305 = arith.mulf %295, %274 : vector<4x32xf32>
    %306 = arith.addf %304, %305 : vector<4x32xf32>
    %c24_148 = arith.constant 24 : index
    %c0_149 = arith.constant 0 : index
    %307 = vector.load %arg1[%c24_148, %c0_149] : memref<32x1xf32, #tpu.memory_space<vmem>>, vector<4x1xf32>
    %308 = vector.broadcast %307 : vector<4x1xf32> to vector<4x32xf32>
    %309 = arith.mulf %308, %306 : vector<4x32xf32>
    %cst_150 = arith.constant 1.000000e+00 : f32
    %310 = vector.broadcast %cst_150 : f32 to vector<4x1xf32>
    %311 = arith.subf %310, %307 : vector<4x1xf32>
    %312 = vector.broadcast %311 : vector<4x1xf32> to vector<4x32xf32>
    %313 = arith.mulf %312, %274 : vector<4x32xf32>
    %314 = arith.addf %309, %313 : vector<4x32xf32>
    %c24_151 = arith.constant 24 : index
    %c0_152 = arith.constant 0 : index
    %315 = vector.load %arg11[%c24_151, %c0_152] : memref<32x32xf32, #tpu.memory_space<vmem>>, vector<4x32xf32>
    tpu.vector_store %arg11[%c24_151, %c0_152], %314 {strides = array<i32>} : memref<32x32xf32, #tpu.memory_space<vmem>>, vector<4x32xf32>,
    %cst_153 = arith.constant dense<0.000000e+00> : vector<4x96xf32>
    %316 = tpu.matmul %314, %31, %cst_153 {dimension_numbers = #tpu.dot_dimension_numbers<[1], [0], [0], [1], [0, 0, 1, 1], [], []>} : vector<4x32xf32>, vector<32x96xf32>, vector<4x96xf32> -> vector<4x96xf32>
    %317 = arith.addf %316, %34 : vector<4x96xf32>
    %c0_154 = arith.constant 0 : index
    %c28 = arith.constant 28 : index
    %c0_155 = arith.constant 0 : index
    %318 = vector.load %arg10[%c0_154, %c28, %c0_155] : memref<3x32x32xf32, #tpu.memory_space<vmem>>, vector<1x4x32xf32>
    %319 = vector.shape_cast %318 : vector<1x4x32xf32> to vector<4x32xf32>
    %320 = vector.extract_strided_slice %317 {offsets = [0, 0], sizes = [4, 32], strides = [1, 1]} : vector<4x96xf32> to vector<4x32xf32>
    %321 = arith.addf %319, %320 : vector<4x32xf32>
    %322 = arith.negf %321 : vector<4x32xf32>
    %323 = math.exp %322 : vector<4x32xf32>
    %cst_156 = arith.constant 1.000000e+00 : f32
    %324 = vector.broadcast %cst_156 : f32 to vector<4x32xf32>
    %325 = arith.addf %324, %323 : vector<4x32xf32>
    %326 = arith.divf %324, %325 : vector<4x32xf32>
    %c1_157 = arith.constant 1 : index
    %c28_158 = arith.constant 28 : index
    %c0_159 = arith.constant 0 : index
    %327 = vector.load %arg10[%c1_157, %c28_158, %c0_159] : memref<3x32x32xf32, #tpu.memory_space<vmem>>, vector<1x4x32xf32>
    %328 = vector.shape_cast %327 : vector<1x4x32xf32> to vector<4x32xf32>
    %329 = vector.extract_strided_slice %317 {offsets = [0, 32], sizes = [4, 32], strides = [1, 1]} : vector<4x96xf32> to vector<4x32xf32>
    %330 = arith.addf %328, %329 : vector<4x32xf32>
    %331 = arith.negf %330 : vector<4x32xf32>
    %332 = math.exp %331 : vector<4x32xf32>
    %cst_160 = arith.constant 1.000000e+00 : f32
    %333 = vector.broadcast %cst_160 : f32 to vector<4x32xf32>
    %334 = arith.addf %333, %332 : vector<4x32xf32>
    %335 = arith.divf %333, %334 : vector<4x32xf32>
    %c2_161 = arith.constant 2 : index
    %c28_162 = arith.constant 28 : index
    %c0_163 = arith.constant 0 : index
    %336 = vector.load %arg10[%c2_161, %c28_162, %c0_163] : memref<3x32x32xf32, #tpu.memory_space<vmem>>, vector<1x4x32xf32>
    %337 = vector.shape_cast %336 : vector<1x4x32xf32> to vector<4x32xf32>
    %338 = vector.extract_strided_slice %317 {offsets = [0, 64], sizes = [4, 32], strides = [1, 1]} : vector<4x96xf32> to vector<4x32xf32>
    %339 = arith.mulf %326, %338 : vector<4x32xf32>
    %340 = arith.addf %337, %339 : vector<4x32xf32>
    %341 = math.tanh %340 : vector<4x32xf32>
    %cst_164 = arith.constant 1.000000e+00 : f32
    %342 = vector.broadcast %cst_164 : f32 to vector<4x32xf32>
    %343 = arith.subf %342, %335 : vector<4x32xf32>
    %344 = arith.mulf %343, %341 : vector<4x32xf32>
    %345 = arith.mulf %335, %314 : vector<4x32xf32>
    %346 = arith.addf %344, %345 : vector<4x32xf32>
    %c28_165 = arith.constant 28 : index
    %c0_166 = arith.constant 0 : index
    %347 = vector.load %arg1[%c28_165, %c0_166] : memref<32x1xf32, #tpu.memory_space<vmem>>, vector<4x1xf32>
    %348 = vector.broadcast %347 : vector<4x1xf32> to vector<4x32xf32>
    %349 = arith.mulf %348, %346 : vector<4x32xf32>
    %cst_167 = arith.constant 1.000000e+00 : f32
    %350 = vector.broadcast %cst_167 : f32 to vector<4x1xf32>
    %351 = arith.subf %350, %347 : vector<4x1xf32>
    %352 = vector.broadcast %351 : vector<4x1xf32> to vector<4x32xf32>
    %353 = arith.mulf %352, %314 : vector<4x32xf32>
    %354 = arith.addf %349, %353 : vector<4x32xf32>
    %c28_168 = arith.constant 28 : index
    %c0_169 = arith.constant 0 : index
    %355 = vector.load %arg11[%c28_168, %c0_169] : memref<32x32xf32, #tpu.memory_space<vmem>>, vector<4x32xf32>
    tpu.vector_store %arg11[%c28_168, %c0_169], %354 {strides = array<i32>} : memref<32x32xf32, #tpu.memory_space<vmem>>, vector<4x32xf32>,
    %c0_170 = arith.constant 0 : index
    %c0_171 = arith.constant 0 : index
    %356 = vector.load %arg9[%c0_170, %c0_171] : memref<4x32xf32, #tpu.memory_space<vmem>>, vector<4x32xf32>
    tpu.vector_store %arg9[%c0_170, %c0_171], %354 {strides = array<i32>} : memref<4x32xf32, #tpu.memory_space<vmem>>, vector<4x32xf32>,
    %c0_172 = arith.constant 0 : index
    %c0_173 = arith.constant 0 : index
    %357 = vector.load %arg11[%c0_172, %c0_173] : memref<32x32xf32, #tpu.memory_space<vmem>>, vector<32x32xf32>
    %c0_174 = arith.constant 0 : index
    %c0_175 = arith.constant 0 : index
    %358 = vector.load %arg6[%c0_174, %c0_175] : memref<32x16xf32, #tpu.memory_space<vmem>>, vector<32x16xf32>
    %cst_176 = arith.constant dense<0.000000e+00> : vector<32x16xf32>
    %359 = tpu.matmul %357, %358, %cst_176 {dimension_numbers = #tpu.dot_dimension_numbers<[1], [0], [0], [1], [0, 0, 1, 1], [], []>} : vector<32x32xf32>, vector<32x16xf32>, vector<32x16xf32> -> vector<32x16xf32>
    %c0_177 = arith.constant 0 : index
    %c0_178 = arith.constant 0 : index
    %360 = vector.load %arg7[%c0_177, %c0_178] : memref<1x16xf32, #tpu.memory_space<vmem>>, vector<1x16xf32>
    %361 = vector.broadcast %360 : vector<1x16xf32> to vector<32x16xf32>
    %362 = arith.addf %359, %361 : vector<32x16xf32>
    %c0_179 = arith.constant 0 : index
    %c0_180 = arith.constant 0 : index
    %363 = vector.load %arg1[%c0_179, %c0_180] : memref<32x1xf32, #tpu.memory_space<vmem>>, vector<32x1xf32>
    %364 = vector.broadcast %363 : vector<32x1xf32> to vector<32x16xf32>
    %365 = arith.mulf %364, %362 : vector<32x16xf32>
    %c0_181 = arith.constant 0 : index
    %c0_182 = arith.constant 0 : index
    %366 = vector.load %arg8[%c0_181, %c0_182] : memref<32x16xf32, #tpu.memory_space<vmem>>, vector<32x16xf32>
    tpu.vector_store %arg8[%c0_181, %c0_182], %365 {strides = array<i32>} : memref<32x16xf32, #tpu.memory_space<vmem>>, vector<32x16xf32>,
    return
  }
}

</mosaic_0001>

<bundles_post_ra>
// kernel: tpu_custom_call.1
= control target key start
LH: loop header
LB: loop body
LE: loop exit
PB: predicated region body
PF: predicated region fallthrough
CT: control target
= control target key end

     0   :  { %15 = vsyncpa [#allocation5], 0  ;;  %s1655_s0 = inlined_call_operand.vmem [shape: f32[32,32], index: 0, kind: input, shape index: {}]   ;;  %s1656_s1 = inlined_call_operand.vmem [shape: f32[32,1], index: 1, kind: input, shape index: {}]   ;;  %s1657_s2 = inlined_call_operand.hbm [shape: f32[3,32,32], index: 2, kind: input, shape index: {}]   ;;  %s1658_s3 = inlined_call_operand.vmem [shape: f32[3,1,32], index: 3, kind: input, shape index: {}]   ;;  %s1659_s4 = inlined_call_operand.vmem [shape: f32[32,96], index: 4, kind: input, shape index: {}]   ;;  %s1660_s5 = inlined_call_operand.vmem [shape: f32[1,96], index: 5, kind: input, shape index: {}]   ;;  %s1661_s6 = inlined_call_operand.vmem [shape: f32[32,16], index: 6, kind: input, shape index: {}]   ;;  %s1662_s7 = inlined_call_operand.vmem [shape: f32[1,16], index: 7, kind: input, shape index: {}]   ;;  %s1663_s8 = inlined_call_operand.vmem [shape: f32[32,16], index: 8, kind: output, shape index: {0}]   ;;  %s1664_s9 = inlined_call_operand.hbm [shape: f32[4,32], index: 9, kind: output, shape index: {1}]  }
   0x1   :  { %16 = vsyncpa [#allocation6], 0  ;;  %s25_s11 = sshll.u32 %s1657_s2, 4  ;;  %s1281_s12 = smov [#allocation4]   ;;  %s26_s11 = int_to_ptr.hbm [resolvable:$true] %s25_s11 }
   0x2   :  { %s27_s13 = sshll.u32 %s1281_s12, 4  ;;  %s1282_s14 = smov 128   ;;  %s28_s13 = int_to_ptr.vmem [resolvable:$true] %s27_s13 }
   0x3   :  { %s1283_s15 = smov 8  }
   0x4   :  { %33 = dma.hbm_to_vmem [thread:$0]  %s26_s11, 1536, %s28_s13, [#allocation5], %s1282_s14, %s1282_s14, %s1283_s15  }
   0x5   :  { %1277 = dma.done.wait [#allocation5], 1536  }
   0x6   :  { %1278 = vsyncadd [#allocation5], 4294965760  ;;  %v55_v0 = vld [vmem:[#allocation4 + $0x18] sm:$0xff]  ;;  %v54_v1 = vld [vmem:[#allocation4 + $0x10] sm:$0xff]  ;;  %vm60_vm0 = vcmask 261120   ;;  %v1284_v19 = vmov 0.0  }
   0x7   :  { %1122 = vmatpush.msra.mxu3 %v55_v0  ;;  %85 = vmatpush.msra.mxu0 %v55_v0  ;;  %v53_v2 = vld [vmem:[#allocation4 + $0x8] sm:$0xff]  ;;  %v52_v3 = vld [vmem:[#allocation4] sm:$0xff]  ;;  %v1345_v4 = vld [vmem:[%s1655_s0 + $0x18] sm:$0xff]  ;;  %v1285_v21 = vmov 0   ;;  %s1286_s17 = smov 96   ;;  %s1287_s18 = smov 64  }
   0x8   :  { %1120 = vmatpush.msra.mxu1 %v55_v0  ;;  %1121 = vmatpush.msra.mxu2 %v55_v0  ;;  %v48_v5 = vld [vmem:[%s1655_s0] sm:$0xff]  ;;  %v1353_v6 = vld [vmem:[%s1659_s4 + $0x18] sm:$0xff]  ;;  %v1358_v7 = vld [vmem:[%s1659_s4 + $0x10] sm:$0xff]  ;;  %vm297_vm9 = vcmask 257024   ;;  %s1288_s29 = smov [#allocation7]   ;;  %s1067_s10 = sshll.u32 %s1664_s9, 4  ;;  %s1068_s10 = int_to_ptr.hbm [resolvable:$true] %s1067_s10 }
   0x9   :  { %1125 = vmatpush.msra.mxu3 %v54_v1  ;;  %86 = vmatpush.msra.mxu0 %v54_v1  ;;  %v49_v8 = vld [vmem:[%s1655_s0 + $0x8] sm:$0xff]  ;;  %v110_v9 = vld [vmem:[#allocation4 + $0x38] sm:$0xff]  ;;  %v50_v10 = vld [vmem:[%s1655_s0 + $0x10] sm:$0xff]  ;;  %s1065_s30 = sshll.u32 %s1288_s29, 4  ;;  %s1066_s30 = int_to_ptr.vmem [resolvable:$true] %s1065_s30 }
   0xa   :  { %1123 = vmatpush.msra.mxu1 %v54_v1  ;;  %1124 = vmatpush.msra.mxu2 %v54_v1  ;;  %v1373_v11 = vld [vmem:[%s1659_s4 + $0x8] sm:$0xff]  ;;  %v109_v12 = vld [vmem:[#allocation4 + $0x30] sm:$0xff]  ;;  %v154_v13 = vld [vmem:[#allocation4 + $0x58] sm:$0xff] }
   0xb   :  { %1128 = vmatpush.msra.mxu3 %v53_v2  ;;  %87 = vmatpush.msra.mxu0 %v53_v2  ;;  %v1380_v14 = vld [vmem:[%s1659_s4] sm:$0xff]  ;;  %v108_v15 = vld [vmem:[#allocation4 + $0x28] sm:$0xff]  ;;  %v153_v16 = vld [vmem:[#allocation4 + $0x50] sm:$0xff] }
   0xc   :  { %1126 = vmatpush.msra.mxu1 %v53_v2  ;;  %1127 = vmatpush.msra.mxu2 %v53_v2  ;;  %v107_v17 = vld [vmem:[#allocation4 + $0x20] sm:$0xff]  ;;  %v152_v18 = vld [vmem:[#allocation4 + $0x48] sm:$0xff] }
   0xd   :  { %1131 = vmatpush.msra.mxu3 %v52_v3  ;;  %88 = vmatpush.msra.mxu0 %v52_v3  ;;  %v151_v20 = vld [vmem:[#allocation4 + $0x40] sm:$0xff] }
   0xe   :  { %1082 = vmatmul.msk.f32.vlgmr.msra.gmra.mxu3 %vm60_vm0, %v1345_v4  ;;  %1079 = vmatmul.msk.f32.vlgmr.msra.gmra.mxu0 %vm60_vm0, %v48_v5  ;;  %v282_v22 = vld [vmem:[%s1656_s1] sm:$0xf]  ;;  %v379_v30 = vld [vmem:[%s1656_s1 + $0x4] sm:$0xf] }
   0xf   :  { %217 = vmatpush.msrb.mxu3 %v1353_v6  ;;  %1129 = vmatpush.msra.mxu1 %v52_v3  ;;  %v1143_v23 = vld [vmem:[%s1658_s3] ss:$0 sm:$0xff]  ;;  %v289_v26 = vsub.f32 1.0, %v282_v22  ;;  %v1429_v32 = vld [vmem:[%s1658_s3 + $0x1] ss:$0 sm:$0xff]  ;;  %v386_v33 = vsub.f32 1.0, %v379_v30 }
  0x10   :  { %1080 = vmatmul.msk.f32.vlgmr.msra.gmra.mxu1 %vm60_vm0, %v49_v8  ;;  %1130 = vmatpush.msra.mxu2 %v52_v3  ;;  %v1435_v36 = vld [vmem:[%s1660_s5] ss:$0 sm:$0xff]  ;;  %v1446_v42 = vld [vmem:[%s1658_s3 + $0x2] ss:$0 sm:$0xff] }
  0x11   :  { %218 = vmatpush.msrb.mxu3 %v1358_v7  ;;  %128 = vmatpush.msrb.mxu1 %v110_v9 }
  0x12   :  { %1081 = vmatmul.msk.f32.vlgmr.msra.gmra.mxu2 %vm60_vm0, %v50_v10  ;;  %602 = vmatpush.msrb.mxu0 %v1353_v6 }
  0x13   :  { %219 = vmatpush.msrb.mxu3 %v1373_v11  ;;  %129 = vmatpush.msrb.mxu1 %v109_v12 }
  0x14   :  { %172 = vmatpush.msrb.mxu2 %v154_v13  ;;  %603 = vmatpush.msrb.mxu0 %v1358_v7 }
  0x15   :  { %220 = vmatpush.msrb.mxu3 %v1380_v14  ;;  %130 = vmatpush.msrb.mxu1 %v108_v15 }
  0x16   :  { %221 = vmatmul.f32.vlgmr.msrb.gmra.mxu3 %v1284_v19  ;;  %173 = vmatpush.msrb.mxu2 %v153_v16 }
  0x17   :  { %131 = vmatpush.msrb.mxu1 %v107_v17  ;;  %314 = vmatpush.msra.mxu3 %v1353_v6 }
  0x18   :  { %1084 = vmatmul.msk.f32.vlgmr.msrb.gmra.mxu1 %vm60_vm0, %v48_v5  ;;  %174 = vmatpush.msrb.mxu2 %v152_v18 }
  0x19   :  { %315 = vmatpush.msra.mxu3 %v1358_v7  ;;  %604 = vmatpush.msrb.mxu0 %v1373_v11 }
  0x1a   :  { %175 = vmatpush.msrb.mxu2 %v151_v20  ;;  %698 = vmatpush.msra.mxu1 %v1353_v6 }
  0x1b   :  { %1089 = vmatmul.msk.f32.vlgmr.msrb.gmra.mxu2 %vm60_vm0, %v48_v5  ;;  %316 = vmatpush.msra.mxu3 %v1373_v11 }
  0x1c   :  { %605 = vmatpush.msrb.mxu0 %v1380_v14  ;;  %699 = vmatpush.msra.mxu1 %v1358_v7 }
  0x1d   :  { %317 = vmatpush.msra.mxu3 %v1380_v14  ;;  %794 = vmatpush.msra.mxu2 %v1353_v6 }
  0x1e   :  { %700 = vmatpush.msra.mxu1 %v1373_v11  ;;  %1140 = vset.pattern.permute.xlu1 %v1285_v21 }
  0x1f   :  { %410 = vmatpush.msrb.mxu3 %v1353_v6  ;;  %795 = vmatpush.msra.mxu2 %v1358_v7 }
  0x20   :  { %1085 = vmatmul.msk.f32.gmra.mxu1 %vm60_vm0, %v49_v8  ;;  %1141 = vset.pattern.permute.xlu0 %v1285_v21 }
  0x21   :  { %411 = vmatpush.msrb.mxu3 %v1358_v7  ;;  %701 = vmatpush.msra.mxu1 %v1380_v14 }
  0x22   :  { %796 = vmatpush.msra.mxu2 %v1373_v11  ;;  %285 = vperm.xlu1 %1140, %v282_v22  }
  0x23   :  { %412 = vmatpush.msrb.mxu3 %v1373_v11  ;;  %1090 = vmatmul.msk.f32.gmra.mxu2 %vm60_vm0, %v49_v8 }
  0x24   :  { %797 = vmatpush.msra.mxu2 %v1380_v14  ;;  %1142 = vset.pattern.permute.xlu2 %v1285_v21 }
  0x25   :  { %413 = vmatpush.msrb.mxu3 %v1380_v14 }
  0x28   :  { %1086 = vmatmul.msk.f32.gmra.mxu1 %vm60_vm0, %v50_v10 }
  0x2a   :  { %292 = vperm.xlu1 %1140, %v289_v26  }
  0x2b   :  { %1091 = vmatmul.msk.f32.gmra.mxu2 %vm60_vm0, %v50_v10 }
  0x30   :  { %1087 = vmatmul.msk.f32.gmra.mxu1 %vm60_vm0, %v1345_v4 }
  0x32   :  { %389 = vperm.xlu1 %1140, %v386_v33  }
  0x33   :  { %1092 = vmatmul.msk.f32.gmra.mxu2 %vm60_vm0, %v1345_v4 }
  0x8b   :  { %v90_v24 = vpop.f32.mrf.mxu0 }
  0x8c   :  { %v91_v25 = vadd.f32 %v1143_v23, %v90_v24 }
  0x8d   :  { %v93_v27 = vpop.f32.mrf.mxu1 }
  0x8e   :  { %102 = vst.msk [vmem:[#allocation2] sm:$0xff] %vm60_vm0, %v91_v25  ;;  %v94_v28 = vadd.f32 %v1143_v23, %v93_v27 }
  0x90   :  { %103 = vst.msk [vmem:[#allocation2 + $0x8] sm:$0xff] %vm60_vm0, %v94_v28 }
  0x91   :  { %v99_v29 = vpop.f32.mrf.mxu3 }
  0x92   :  { %v100_v31 = vadd.f32 %v1143_v23, %v99_v29  ;;  %v1463_v29 = vld [vmem:[%s1656_s1 + $0x8] sm:$0xf] }
  0x94   :  { %105 = vst.msk [vmem:[#allocation2 + $0x18] sm:$0xff] %vm60_vm0, %v100_v31  ;;  %v286_v15 = vpop.permute.xlu1 %285  ;;  %v1469_v31 = vld [vmem:[%s1656_s1 + $0xc] sm:$0xf] }
  0x95   :  { %v133_v34 = vpop.f32.mrf.mxu1  ;;  %v96_v35 = vpop.f32.mrf.mxu2  ;;  %v225_v41 = vld [vmem:[#allocation2] sm:$0xf] }
  0x96   :  { %v134_v37 = vadd.f32 %v1429_v32, %v133_v34  ;;  %v97_v38 = vadd.f32 %v1143_v23, %v96_v35  ;;  %v322_v35 = vld [vmem:[#allocation2 + $0x4] sm:$0xf] }
  0x98   :  { %146 = vst.msk [vmem:[#allocation2 + $0x20] sm:$0xff] %vm60_vm0, %v134_v37 }
  0x99   :  { %v222_v39 = vpop.f32.mrf.mxu3  ;;  %104 = vst.msk [vmem:[#allocation2 + $0x10] sm:$0xff] %vm60_vm0, %v97_v38 }
  0x9a   :  { %v223_v40 = vadd.f32 %v1435_v36, %v222_v39 }
  0x9c   :  { %248 = vrot.lane.b32.xlu0 %v223_v40, %s1286_s17  ;;  %v226_v43 = vadd.f32 %v225_v41, %v223_v40  ;;  %v293_v25 = vpop.permute.xlu1 %292 }
  0x9d   :  { %v295_v27 = vmul.f32 0.0, %v293_v25 }
  0x9e   :  { %v177_v44 = vpop.f32.mrf.mxu2  ;;  %v1093_v46 = vmul.f32 -1.442695, %v226_v43 }
  0x9f   :  { %v178_v45 = vadd.f32 %v1446_v42, %v177_v44  ;;  %v246_v50 = vld [vmem:[#allocation2 + $0x20] sm:$0xf]  ;;  %v343_v44 = vld [vmem:[#allocation2 + $0x24] sm:$0xf] }
  0xa0   :  { %1148 = vpow2.f32 %v1093_v46 }
  0xa1   :  { %190 = vst.msk [vmem:[#allocation2 + $0x40] sm:$0xff] %vm60_vm0, %v178_v45 }
  0xa4   :  { %272 = vrot.lane.b32.xlu0 %v223_v40, %s1287_s18 }
  0xa6   :  { %v1149_v47 = vpop.eup %1148 }
  0xa7   :  { %v230_v48 = vadd.f32 1.0, %v1149_v47 }
  0xa8   :  { %v271_v3 = vld [vmem:[#allocation2 + $0x40] sm:$0xf] }
  0xa9   :  { %1150 = vrcp.f32 %v230_v48  ;;  %v242_v59 = vand.u32 2147483648, %v230_v48  ;;  %vm236_vm2 = vweird.f32 %v230_v48  ;;  %v240_v61 = vand.u32 2147483647, %v230_v48 }
  0xab   :  { %v243_v0 = vor.u32 1.1754944e-38, %v242_v59  ;;  %vm241_vm4 = vcmp.eq.f32.partialorder %v240_v61, 8.507059e+37 }
  0xac   :  { %382 = vperm.xlu0 %1141, %v379_v30   ;;  %v482_v30 = vsub.f32 1.0, %v1463_v29 }
  0xaf   :  { %v1151_v49 = vpop.eup %1150 }
  0xb0   :  { %v232_v51 = vmul.f32 %v1151_v49, %v230_v48  ;;  %vm237_vm1 = vweird.f32 %v1151_v49 }
  0xb1   :  { %vm238_vm3 = vmor %vm236_vm2, %vm237_vm1 }
  0xb2   :  { %v233_v54 = vsub.f32 1.0, %v232_v51 }
  0xb4   :  { %v234_v56 = vmul.f32 %v1151_v49, %v233_v54  ;;  %485 = vperm.xlu0 %1141, %v482_v30  }
  0xb6   :  { %v235_v57 = vadd.f32 %v1151_v49, %v234_v56 }
  0xb8   :  { %v239_v62 = vsel %vm238_vm3, %v1151_v49, %v235_v57 }
  0xb9   :  { %v244_v1 = vsel %vm241_vm4, %v243_v0, %v239_v62  ;;  %v368_v62 = vld [vmem:[#allocation2 + $0x44] sm:$0xf] }
  0xbc   :  { %574 = vperm.xlu0 %1141, %v1469_v31  }
 0x10e   :  { %v249_v52 = vpop.permute.xlu0 %248 }
 0x10f   :  { %v251_v53 = vadd.f32 %v249_v52, %v246_v50 }
 0x111   :  { %v1094_v55 = vmul.f32 -1.442695, %v251_v53 }
 0x113   :  { %1152 = vpow2.f32 %v1094_v55 }
 0x116   :  { %v273_v63 = vpop.permute.xlu0 %272 }
 0x117   :  { %v275_v2 = vmul.f32 %v273_v63, %v244_v1 }
 0x119   :  { %v1153_v58 = vpop.eup %1152  ;;  %v276_v8 = vadd.f32 %v275_v2, %v271_v3 }
 0x11a   :  { %v255_v60 = vadd.f32 1.0, %v1153_v58 }
 0x11c   :  { %1154 = vrcp.f32 %v255_v60  ;;  %v267_v10 = vand.u32 2147483648, %v255_v60  ;;  %v265_v13 = vand.u32 2147483647, %v255_v60  ;;  %vm261_vm6 = vweird.f32 %v255_v60 }
 0x11d   :  { %1156 = vtanh.f32 %v276_v8 }
 0x11e   :  { %v268_v17 = vor.u32 1.1754944e-38, %v267_v10  ;;  %vm266_vm8 = vcmp.eq.f32.partialorder %v265_v13, 8.507059e+37 }
 0x122   :  { %v1155_v4 = vpop.eup %1154 }
 0x123   :  { %v257_v5 = vmul.f32 %v1155_v4, %v255_v60  ;;  %vm262_vm5 = vweird.f32 %v1155_v4  ;;  %v1157_v21 = vpop.eup %1156 }
 0x124   :  { %vm263_vm7 = vmor %vm261_vm6, %vm262_vm5 }
 0x125   :  { %v258_v9 = vsub.f32 1.0, %v257_v5 }
 0x127   :  { %v259_v12 = vmul.f32 %v1155_v4, %v258_v9 }
 0x129   :  { %v260_v16 = vadd.f32 %v1155_v4, %v259_v12 }
 0x12b   :  { %v264_v18 = vsel %vm263_vm7, %v1155_v4, %v260_v16 }
 0x12c   :  { %v269_v19 = vsel %vm266_vm8, %v268_v17, %v264_v18  ;;  %v390_v17 = vpop.permute.xlu1 %389  ;;  %v383_v18 = vpop.permute.xlu0 %382 }
 0x12d   :  { %v278_v20 = vsub.f32 1.0, %v269_v19  ;;  %v280_v23 = vmul.f32 0.0, %v269_v19 }
 0x12f   :  { %v279_v22 = vmul.f32 %v1157_v21, %v278_v20 }
 0x131   :  { %v281_v24 = vadd.f32 %v280_v23, %v279_v22  ;;  %v136_v22 = vpop.f32.mrf.mxu1 }
 0x132   :  { %v137_v23 = vadd.f32 %v1429_v32, %v136_v22 }
 0x133   :  { %v288_v26 = vmul.f32 %v286_v15, %v281_v24 }
 0x134   :  { %147 = vst.msk [vmem:[#allocation2 + $0x28] sm:$0xff] %vm60_vm0, %v137_v23 }
 0x135   :  { %v1450_v28 = vadd.f32 %v295_v27, %v288_v26 }
 0x137   :  { %298 = vst.msk [vmem:[#allocation3] sm:$0xf] %vm297_vm9, %v1450_v28  ;;  %1095 = vmatmul.msk.f32.vlgmr.msra.gmra.mxu3 %vm60_vm0, %v1450_v28  ;;  %v392_v19 = vmul.f32 %v390_v17, %v1450_v28  ;;  %v514_v17 = vld [vmem:[#allocation2 + $0xc] sm:$0xf] }
 0x138   :  { %506 = vmatpush.msra.mxu3 %v1353_v6 }
 0x13a   :  { %507 = vmatpush.msra.mxu3 %v1358_v7 }
 0x13b   :  { %v439_v30 = vld [vmem:[#allocation2 + $0x28] sm:$0xf] }
 0x13c   :  { %508 = vmatpush.msra.mxu3 %v1373_v11 }
 0x13e   :  { %509 = vmatpush.msra.mxu3 %v1380_v14 }
 0x1ba   :  { %v319_v33 = vpop.f32.mrf.mxu3 }
 0x1bb   :  { %v320_v34 = vadd.f32 %v1435_v36, %v319_v33 }
 0x1bd   :  { %345 = vrot.lane.b32.xlu2 %v320_v34, %s1286_s17  ;;  %v323_v37 = vadd.f32 %v322_v35, %v320_v34 }
 0x1bf   :  { %v1096_v38 = vmul.f32 -1.442695, %v323_v37 }
 0x1c1   :  { %1158 = vpow2.f32 %v1096_v38 }
 0x1c5   :  { %369 = vrot.lane.b32.xlu2 %v320_v34, %s1287_s18 }
 0x1c7   :  { %v1159_v39 = vpop.eup %1158 }
 0x1c8   :  { %v327_v40 = vadd.f32 1.0, %v1159_v39 }
 0x1ca   :  { %1160 = vrcp.f32 %v327_v40  ;;  %v339_v52 = vand.u32 2147483648, %v327_v40  ;;  %vm333_vm11 = vweird.f32 %v327_v40  ;;  %v337_v54 = vand.u32 2147483647, %v327_v40 }
 0x1cc   :  { %v340_v57 = vor.u32 1.1754944e-38, %v339_v52  ;;  %vm338_vm13 = vcmp.eq.f32.partialorder %v337_v54, 8.507059e+37 }
 0x1d0   :  { %v1161_v41 = vpop.eup %1160 }
 0x1d1   :  { %v329_v43 = vmul.f32 %v1161_v41, %v327_v40  ;;  %vm334_vm10 = vweird.f32 %v1161_v41 }
 0x1d2   :  { %vm335_vm12 = vmor %vm333_vm11, %vm334_vm10 }
 0x1d3   :  { %v330_v47 = vsub.f32 1.0, %v329_v43 }
 0x1d5   :  { %v331_v49 = vmul.f32 %v1161_v41, %v330_v47 }
 0x1d7   :  { %v332_v50 = vadd.f32 %v1161_v41, %v331_v49 }
 0x1d9   :  { %v336_v55 = vsel %vm335_vm12, %v1161_v41, %v332_v50 }
 0x1da   :  { %v341_v58 = vsel %vm338_vm13, %v340_v57, %v336_v55 }
 0x217   :  { %v346_v45 = vpop.permute.xlu2 %345 }
 0x218   :  { %v348_v46 = vadd.f32 %v346_v45, %v343_v44 }
 0x21a   :  { %v1097_v48 = vmul.f32 -1.442695, %v348_v46 }
 0x21c   :  { %1162 = vpow2.f32 %v1097_v48 }
 0x21f   :  { %v370_v56 = vpop.permute.xlu2 %369 }
 0x220   :  { %v372_v59 = vmul.f32 %v370_v56, %v341_v58 }
 0x222   :  { %v1163_v51 = vpop.eup %1162  ;;  %v373_v63 = vadd.f32 %v372_v59, %v368_v62 }
 0x223   :  { %v352_v53 = vadd.f32 1.0, %v1163_v51 }
 0x225   :  { %1164 = vrcp.f32 %v352_v53  ;;  %v364_v1 = vand.u32 2147483648, %v352_v53  ;;  %v362_v3 = vand.u32 2147483647, %v352_v53  ;;  %vm358_vm15 = vweird.f32 %v352_v53 }
 0x226   :  { %1166 = vtanh.f32 %v373_v63 }
 0x227   :  { %v365_v5 = vor.u32 1.1754944e-38, %v364_v1  ;;  %vm363_vm2 = vcmp.eq.f32.partialorder %v362_v3, 8.507059e+37 }
 0x22b   :  { %v1165_v60 = vpop.eup %1164 }
 0x22c   :  { %v354_v61 = vmul.f32 %v1165_v60, %v352_v53  ;;  %vm359_vm14 = vweird.f32 %v1165_v60  ;;  %v1167_v12 = vpop.eup %1166 }
 0x22d   :  { %vm360_vm1 = vmor %vm358_vm15, %vm359_vm14 }
 0x22e   :  { %v355_v0 = vsub.f32 1.0, %v354_v61 }
 0x230   :  { %v356_v2 = vmul.f32 %v1165_v60, %v355_v0 }
 0x232   :  { %v357_v4 = vadd.f32 %v1165_v60, %v356_v2 }
 0x234   :  { %v361_v8 = vsel %vm360_vm1, %v1165_v60, %v357_v4 }
 0x235   :  { %v366_v9 = vsel %vm363_vm2, %v365_v5, %v361_v8  ;;  %v486_v5 = vpop.permute.xlu0 %485 }
 0x236   :  { %v375_v10 = vsub.f32 1.0, %v366_v9  ;;  %v377_v15 = vmul.f32 %v366_v9, %v1450_v28 }
 0x238   :  { %v376_v13 = vmul.f32 %v1167_v12, %v375_v10 }
 0x23a   :  { %v378_v16 = vadd.f32 %v377_v15, %v376_v13  ;;  %v578_v15 = vsub.f32 1.0, %v1469_v31 }
 0x23c   :  { %v385_v20 = vmul.f32 %v383_v18, %v378_v16  ;;  %v1510_v16 = vld [vmem:[%s1656_s1 + $0x10] sm:$0xf] }
 0x23e   :  { %v1477_v21 = vadd.f32 %v392_v19, %v385_v20 }
 0x240   :  { %394 = vst.msk [vmem:[#allocation3 + $0x4] sm:$0xf] %vm297_vm9, %v1477_v21  ;;  %1098 = vmatmul.msk.f32.vlgmr.msrb.gmra.mxu3 %vm60_vm0, %v1477_v21  ;;  %v488_v8 = vmul.f32 %v486_v5, %v1477_v21 }
 0x241   :  { %890 = vmatpush.msrb.mxu3 %v1353_v6  ;;  %v418_v6 = vld [vmem:[#allocation2 + $0x8] sm:$0xf] }
 0x243   :  { %891 = vmatpush.msrb.mxu3 %v1358_v7 }
 0x245   :  { %892 = vmatpush.msrb.mxu3 %v1373_v11  ;;  %v180_v11 = vpop.f32.mrf.mxu2 }
 0x247   :  { %893 = vmatpush.msrb.mxu3 %v1380_v14  ;;  %v181_v14 = vadd.f32 %v1446_v42, %v180_v11  ;;  %v979_v11 = vld [vmem:[%s1661_s6 + $0x18] sm:$0xff] }
 0x248   :  { %1008 = vmatpush.msra.mxu0 %v979_v11 }
 0x249   :  { %191 = vst.msk [vmem:[#allocation2 + $0x48] sm:$0xff] %vm60_vm0, %v181_v14  ;;  %v978_v14 = vld [vmem:[%s1661_s6 + $0x10] sm:$0xff] }
 0x24a   :  { %1009 = vmatpush.msra.mxu0 %v978_v14 }
 0x250   :  { %v464_v51 = vld [vmem:[#allocation2 + $0x48] sm:$0xf] }
 0x2c3   :  { %v415_v24 = vpop.f32.mrf.mxu3 }
 0x2c4   :  { %v416_v25 = vadd.f32 %v1435_v36, %v415_v24  ;;  %v535_v24 = vld [vmem:[#allocation2 + $0x2c] sm:$0xf] }
 0x2c6   :  { %465 = vrot.lane.b32.xlu1 %v416_v25, %s1287_s18  ;;  %441 = vrot.lane.b32.xlu2 %v416_v25, %s1286_s17  ;;  %v419_v7 = vadd.f32 %v418_v6, %v416_v25 }
 0x2c8   :  { %v1099_v26 = vmul.f32 -1.442695, %v419_v7 }
 0x2ca   :  { %1168 = vpow2.f32 %v1099_v26 }
 0x2ce   :  { %478 = vperm.xlu2 %1142, %v1463_v29  }
 0x2d0   :  { %v1169_v27 = vpop.eup %1168 }
 0x2d1   :  { %v423_v28 = vadd.f32 1.0, %v1169_v27 }
 0x2d3   :  { %1170 = vrcp.f32 %v423_v28  ;;  %v435_v44 = vand.u32 2147483648, %v423_v28  ;;  %vm429_vm4 = vweird.f32 %v423_v28  ;;  %v433_v45 = vand.u32 2147483647, %v423_v28 }
 0x2d5   :  { %v436_v49 = vor.u32 1.1754944e-38, %v435_v44  ;;  %vm434_vm6 = vcmp.eq.f32.partialorder %v433_v45, 8.507059e+37  ;;  %v560_v44 = vld [vmem:[#allocation2 + $0x4c] sm:$0xf] }
 0x2d9   :  { %v1171_v35 = vpop.eup %1170 }
 0x2da   :  { %v425_v38 = vmul.f32 %v1171_v35, %v423_v28  ;;  %vm430_vm3 = vweird.f32 %v1171_v35 }
 0x2db   :  { %vm431_vm5 = vmor %vm429_vm4, %vm430_vm3 }
 0x2dc   :  { %v426_v29 = vsub.f32 1.0, %v425_v38 }
 0x2de   :  { %v427_v41 = vmul.f32 %v1171_v35, %v426_v29 }
 0x2e0   :  { %v428_v43 = vadd.f32 %v1171_v35, %v427_v41 }
 0x2e2   :  { %v432_v48 = vsel %vm431_vm5, %v1171_v35, %v428_v43 }
 0x2e3   :  { %v437_v53 = vsel %vm434_vm6, %v436_v49, %v432_v48 }
 0x320   :  { %v442_v33 = vpop.permute.xlu2 %441 }
 0x321   :  { %v444_v34 = vadd.f32 %v442_v33, %v439_v30  ;;  %v977_v33 = vld [vmem:[%s1661_s6 + $0x8] sm:$0xff] }
 0x322   :  { %1010 = vmatpush.msra.mxu0 %v977_v33 }
 0x323   :  { %v1100_v37 = vmul.f32 -1.442695, %v444_v34 }
 0x325   :  { %1172 = vpow2.f32 %v1100_v37  ;;  %v976_v37 = vld [vmem:[%s1661_s6] sm:$0xff] }
 0x326   :  { %1011 = vmatpush.msra.mxu0 %v976_v37 }
 0x328   :  { %v479_v3 = vpop.permute.xlu2 %478 }
 0x32b   :  { %v1173_v39 = vpop.eup %1172 }
 0x32c   :  { %v448_v40 = vadd.f32 1.0, %v1173_v39 }
 0x32e   :  { %1174 = vrcp.f32 %v448_v40  ;;  %v460_v56 = vand.u32 2147483648, %v448_v40  ;;  %v458_v57 = vand.u32 2147483647, %v448_v40  ;;  %vm454_vm8 = vweird.f32 %v448_v40 }
 0x330   :  { %v461_v61 = vor.u32 1.1754944e-38, %v460_v56  ;;  %vm459_vm11 = vcmp.eq.f32.partialorder %v458_v57, 8.507059e+37 }
 0x334   :  { %v1175_v46 = vpop.eup %1174 }
 0x335   :  { %v450_v47 = vmul.f32 %v1175_v46, %v448_v40  ;;  %vm455_vm7 = vweird.f32 %v1175_v46 }
 0x336   :  { %vm456_vm10 = vmor %vm454_vm8, %vm455_vm7 }
 0x337   :  { %v451_v50 = vsub.f32 1.0, %v450_v47 }
 0x338   :  { %v466_v52 = vpop.permute.xlu1 %465 }
 0x339   :  { %v468_v54 = vmul.f32 %v466_v52, %v437_v53  ;;  %v452_v55 = vmul.f32 %v1175_v46, %v451_v50 }
 0x33b   :  { %v469_v58 = vadd.f32 %v468_v54, %v464_v51  ;;  %v453_v59 = vadd.f32 %v1175_v46, %v452_v55 }
 0x33d   :  { %1176 = vtanh.f32 %v469_v58  ;;  %v457_v60 = vsel %vm456_vm10, %v1175_v46, %v453_v59 }
 0x33e   :  { %v462_v62 = vsel %vm459_vm11, %v461_v61, %v457_v60  ;;  %v575_v61 = vpop.permute.xlu0 %574 }
 0x33f   :  { %v471_v63 = vsub.f32 1.0, %v462_v62  ;;  %v473_v1 = vmul.f32 %v462_v62, %v1477_v21 }
 0x343   :  { %v1177_v0 = vpop.eup %1176 }
 0x344   :  { %v472_v2 = vmul.f32 %v1177_v0, %v471_v63 }
 0x346   :  { %v474_v4 = vadd.f32 %v473_v1, %v472_v2  ;;  %v972_v1 = vld [vmem:[#allocation3] sm:$0xff] }
 0x348   :  { %v481_v9 = vmul.f32 %v479_v3, %v474_v4  ;;  %v139_v3 = vpop.f32.mrf.mxu1 }
 0x349   :  { %v140_v4 = vadd.f32 %v1429_v32, %v139_v3 }
 0x34a   :  { %v1497_v10 = vadd.f32 %v488_v8, %v481_v9  ;;  %v674_v9 = vsub.f32 1.0, %v1510_v16 }
 0x34b   :  { %148 = vst.msk [vmem:[#allocation2 + $0x30] sm:$0xff] %vm60_vm0, %v140_v4 }
 0x34c   :  { %490 = vst.msk [vmem:[#allocation3 + $0x8] sm:$0xf] %vm297_vm9, %v1497_v10  ;;  %1101 = vmatmul.msk.f32.vlgmr.msra.gmra.mxu3 %vm60_vm0, %v1497_v10 }
 0x3cf   :  { %v511_v12 = vpop.f32.mrf.mxu3 }
 0x3d0   :  { %v512_v13 = vadd.f32 %v1435_v36, %v511_v12  ;;  %v610_v12 = vld [vmem:[#allocation2 + $0x10] sm:$0xf] }
 0x3d2   :  { %561 = vrot.lane.b32.xlu2 %v512_v13, %s1287_s18  ;;  %537 = vrot.lane.b32.xlu1 %v512_v13, %s1286_s17  ;;  %v515_v18 = vadd.f32 %v514_v17, %v512_v13  ;;  %v183_v17 = vpop.f32.mrf.mxu2 }
 0x3d4   :  { %v1102_v19 = vmul.f32 -1.442695, %v515_v18  ;;  %v184_v18 = vadd.f32 %v1446_v42, %v183_v17 }
 0x3d6   :  { %1178 = vpow2.f32 %v1102_v19  ;;  %192 = vst.msk [vmem:[#allocation2 + $0x50] sm:$0xff] %vm60_vm0, %v184_v18 }
 0x3da   :  { %581 = vperm.xlu1 %1140, %v578_v15  }
 0x3dc   :  { %v1179_v20 = vpop.eup %1178 }
 0x3dd   :  { %v519_v21 = vadd.f32 1.0, %v1179_v20 }
 0x3df   :  { %1180 = vrcp.f32 %v519_v21  ;;  %v531_v30 = vand.u32 2147483648, %v519_v21  ;;  %vm525_vm13 = vweird.f32 %v519_v21  ;;  %v529_v34 = vand.u32 2147483647, %v519_v21 }
 0x3e1   :  { %v532_v39 = vor.u32 1.1754944e-38, %v531_v30  ;;  %vm530_vm15 = vcmp.eq.f32.partialorder %v529_v34, 8.507059e+37 }
 0x3e2   :  { %670 = vperm.xlu1 %1140, %v1510_v16   ;;  %v631_v16 = vld [vmem:[#allocation2 + $0x30] sm:$0xf] }
 0x3e5   :  { %v1181_v22 = vpop.eup %1180 }
 0x3e6   :  { %v521_v23 = vmul.f32 %v1181_v22, %v519_v21  ;;  %vm526_vm12 = vweird.f32 %v1181_v22 }
 0x3e7   :  { %vm527_vm14 = vmor %vm525_vm13, %vm526_vm12 }
 0x3e8   :  { %v522_v6 = vsub.f32 1.0, %v521_v23 }
 0x3ea   :  { %v523_v26 = vmul.f32 %v1181_v22, %v522_v6 }
 0x3ec   :  { %v524_v27 = vadd.f32 %v1181_v22, %v523_v26  ;;  %v142_v26 = vpop.f32.mrf.mxu1 }
 0x3ed   :  { %v143_v14 = vadd.f32 %v1429_v32, %v142_v26 }
 0x3ee   :  { %v528_v38 = vsel %vm527_vm14, %v1181_v22, %v524_v27 }
 0x3ef   :  { %v533_v40 = vsel %vm530_vm15, %v532_v39, %v528_v38  ;;  %149 = vst.msk [vmem:[#allocation2 + $0x38] sm:$0xff] %vm60_vm0, %v143_v14 }
 0x42c   :  { %v562_v29 = vpop.permute.xlu2 %561 }
 0x42d   :  { %v564_v41 = vmul.f32 %v562_v29, %v533_v40  ;;  %v656_v29 = vld [vmem:[#allocation2 + $0x50] sm:$0xf] }
 0x42f   :  { %v565_v46 = vadd.f32 %v564_v41, %v560_v44 }
 0x444   :  { %v538_v25 = vpop.permute.xlu1 %537 }
 0x445   :  { %v540_v31 = vadd.f32 %v538_v25, %v535_v24 }
 0x447   :  { %v1103_v7 = vmul.f32 -1.442695, %v540_v31 }
 0x449   :  { %1182 = vpow2.f32 %v1103_v7 }
 0x44c   :  { %v582_v59 = vpop.permute.xlu1 %581 }
 0x44d   :  { %v584_v63 = vmul.f32 %v582_v59, %v1497_v10 }
 0x44f   :  { %v1183_v28 = vpop.eup %1182 }
 0x450   :  { %v544_v35 = vadd.f32 1.0, %v1183_v28 }
 0x452   :  { %1184 = vrcp.f32 %v544_v35  ;;  %v556_v48 = vand.u32 2147483648, %v544_v35  ;;  %v554_v50 = vand.u32 2147483647, %v544_v35  ;;  %vm550_vm2 = vweird.f32 %v544_v35 }
 0x453   :  { %1186 = vtanh.f32 %v565_v46 }
 0x454   :  { %v557_v52 = vor.u32 1.1754944e-38, %v556_v48  ;;  %vm555_vm4 = vcmp.eq.f32.partialorder %v554_v50, 8.507059e+37 }
 0x458   :  { %v1185_v43 = vpop.eup %1184 }
 0x459   :  { %v546_v45 = vmul.f32 %v1185_v43, %v544_v35  ;;  %vm551_vm1 = vweird.f32 %v1185_v43  ;;  %v1187_v56 = vpop.eup %1186 }
 0x45a   :  { %vm552_vm3 = vmor %vm550_vm2, %vm551_vm1 }
 0x45b   :  { %v547_v47 = vsub.f32 1.0, %v546_v45 }
 0x45d   :  { %v548_v49 = vmul.f32 %v1185_v43, %v547_v47 }
 0x45f   :  { %v549_v51 = vadd.f32 %v1185_v43, %v548_v49 }
 0x461   :  { %v553_v53 = vsel %vm552_vm3, %v1185_v43, %v549_v51 }
 0x462   :  { %v558_v54 = vsel %vm555_vm4, %v557_v52, %v553_v53 }
 0x463   :  { %v567_v55 = vsub.f32 1.0, %v558_v54  ;;  %v569_v57 = vmul.f32 %v558_v54, %v1497_v10  ;;  %v1544_v10 = vld [vmem:[%s1656_s1 + $0x14] sm:$0xf] }
 0x465   :  { %v568_v58 = vmul.f32 %v1187_v56, %v567_v55  ;;  %v671_v56 = vpop.permute.xlu1 %670 }
 0x467   :  { %v570_v60 = vadd.f32 %v569_v57, %v568_v58 }
 0x469   :  { %v577_v62 = vmul.f32 %v575_v61, %v570_v60 }
 0x46b   :  { %v1527_v0 = vadd.f32 %v584_v63, %v577_v62  ;;  %v770_v62 = vsub.f32 1.0, %v1544_v10  ;;  %v1566_v63 = vld [vmem:[%s1656_s1 + $0x18] sm:$0xf] }
 0x46d   :  { %586 = vst.msk [vmem:[#allocation3 + $0xc] sm:$0xf] %vm297_vm9, %v1527_v0  ;;  %1104 = vmatmul.msk.f32.vlgmr.msrb.gmra.mxu0 %vm60_vm0, %v1527_v0 }
 0x474   :  { %v973_v2 = vld [vmem:[#allocation3 + $0x8] sm:$0xff] }
 0x475   :  { %1116 = vmatmul.msk.f32.vlgmr.msra.gmra.mxu0 %vm60_vm0, %v972_v1 }
 0x47d   :  { %1117 = vmatmul.msk.f32.gmra.mxu0 %vm60_vm0, %v973_v2 }
 0x4ea   :  { %v607_v5 = vpop.f32.mrf.mxu0 }
 0x4eb   :  { %v608_v8 = vadd.f32 %v1435_v36, %v607_v5 }
 0x4ed   :  { %657 = vrot.lane.b32.xlu0 %v608_v8, %s1287_s18  ;;  %633 = vrot.lane.b32.xlu2 %v608_v8, %s1286_s17  ;;  %v611_v13 = vadd.f32 %v610_v12, %v608_v8 }
 0x4ef   :  { %v1105_v15 = vmul.f32 -1.442695, %v611_v13 }
 0x4f1   :  { %1188 = vpow2.f32 %v1105_v15 }
 0x4f5   :  { %677 = vperm.xlu2 %1142, %v674_v9   ;;  %v727_v9 = vld [vmem:[#allocation2 + $0x34] sm:$0xf] }
 0x4f7   :  { %v1189_v19 = vpop.eup %1188 }
 0x4f8   :  { %v615_v20 = vadd.f32 1.0, %v1189_v19 }
 0x4fa   :  { %1190 = vrcp.f32 %v615_v20  ;;  %v627_v28 = vand.u32 2147483648, %v615_v20  ;;  %vm621_vm6 = vweird.f32 %v615_v20  ;;  %v625_v30 = vand.u32 2147483647, %v615_v20 }
 0x4fc   :  { %v628_v37 = vor.u32 1.1754944e-38, %v627_v28  ;;  %vm626_vm8 = vcmp.eq.f32.partialorder %v625_v30, 8.507059e+37 }
 0x4fd   :  { %766 = vperm.xlu2 %1142, %v1544_v10  }
 0x500   :  { %v1191_v23 = vpop.eup %1190 }
 0x501   :  { %v617_v25 = vmul.f32 %v1191_v23, %v615_v20  ;;  %vm622_vm5 = vweird.f32 %v1191_v23 }
 0x502   :  { %vm623_vm7 = vmor %vm621_vm6, %vm622_vm5 }
 0x503   :  { %v618_v31 = vsub.f32 1.0, %v617_v25 }
 0x505   :  { %v619_v11 = vmul.f32 %v1191_v23, %v618_v31  ;;  %v186_v31 = vpop.f32.mrf.mxu2 }
 0x507   :  { %v620_v27 = vadd.f32 %v1191_v23, %v619_v11  ;;  %v752_v11 = vld [vmem:[#allocation2 + $0x54] sm:$0xf] }
 0x509   :  { %v624_v35 = vsel %vm623_vm7, %v1191_v23, %v620_v27 }
 0x50a   :  { %v629_v40 = vsel %vm626_vm8, %v628_v37, %v624_v35 }
 0x547   :  { %v634_v21 = vpop.permute.xlu2 %633 }
 0x548   :  { %v636_v22 = vadd.f32 %v634_v21, %v631_v16 }
 0x54a   :  { %v1106_v24 = vmul.f32 -1.442695, %v636_v22 }
 0x54c   :  { %1192 = vpow2.f32 %v1106_v24 }
 0x54f   :  { %v678_v54 = vpop.permute.xlu2 %677 }
 0x550   :  { %v680_v57 = vmul.f32 %v678_v54, %v1527_v0 }
 0x552   :  { %v1193_v6 = vpop.eup %1192 }
 0x553   :  { %v640_v7 = vadd.f32 1.0, %v1193_v6 }
 0x555   :  { %1194 = vrcp.f32 %v640_v7  ;;  %v652_v32 = vand.u32 2147483648, %v640_v7  ;;  %v650_v44 = vand.u32 2147483647, %v640_v7  ;;  %vm646_vm11 = vweird.f32 %v640_v7 }
 0x557   :  { %v653_v47 = vor.u32 1.1754944e-38, %v652_v32  ;;  %vm651_vm13 = vcmp.eq.f32.partialorder %v650_v44, 8.507059e+37  ;;  %v767_v44 = vpop.permute.xlu2 %766 }
 0x55b   :  { %v1195_v33 = vpop.eup %1194 }
 0x55c   :  { %v642_v34 = vmul.f32 %v1195_v33, %v640_v7  ;;  %vm647_vm10 = vweird.f32 %v1195_v33  ;;  %v187_v7 = vadd.f32 %v1446_v42, %v186_v31 }
 0x55d   :  { %vm648_vm12 = vmor %vm646_vm11, %vm647_vm10 }
 0x55e   :  { %v643_v38 = vsub.f32 1.0, %v642_v34  ;;  %193 = vst.msk [vmem:[#allocation2 + $0x58] sm:$0xff] %vm60_vm0, %v187_v7 }
 0x55f   :  { %v658_v39 = vpop.permute.xlu0 %657 }
 0x560   :  { %v644_v41 = vmul.f32 %v1195_v33, %v643_v38  ;;  %v660_v43 = vmul.f32 %v658_v39, %v629_v40 }
 0x562   :  { %v645_v45 = vadd.f32 %v1195_v33, %v644_v41  ;;  %v661_v46 = vadd.f32 %v660_v43, %v656_v29 }
 0x564   :  { %v649_v48 = vsel %vm648_vm12, %v1195_v33, %v645_v45  ;;  %1196 = vtanh.f32 %v661_v46  ;;  %vm1053_vm12 = vcmask 130048  }
 0x565   :  { %v654_v49 = vsel %vm651_vm13, %v653_v47, %v649_v48 }
 0x566   :  { %v663_v50 = vsub.f32 1.0, %v654_v49  ;;  %v665_v53 = vmul.f32 %v654_v49, %v1527_v0  ;;  %v706_v0 = vld [vmem:[#allocation2 + $0x14] sm:$0xf] }
 0x56a   :  { %v1197_v51 = vpop.eup %1196 }
 0x56b   :  { %v664_v52 = vmul.f32 %v1197_v51, %v663_v50  ;;  %v866_v51 = vsub.f32 1.0, %v1566_v63 }
 0x56d   :  { %v666_v55 = vadd.f32 %v665_v53, %v664_v52  ;;  %v1587_v52 = vld [vmem:[%s1656_s1 + $0x1c] sm:$0xf]  ;;  %v1026_v53 = vld [vmem:[%s1656_s1 + $0x8] sm:$0xff] }
 0x56f   :  { %v673_v58 = vmul.f32 %v671_v56, %v666_v55 }
 0x571   :  { %v1553_v59 = vadd.f32 %v680_v57, %v673_v58 }
 0x573   :  { %682 = vst.msk [vmem:[#allocation3 + $0x10] sm:$0xf] %vm297_vm9, %v1553_v59  ;;  %1107 = vmatmul.msk.f32.vlgmr.msra.gmra.mxu1 %vm60_vm0, %v1553_v59 }
 0x5f0   :  { %v703_v60 = vpop.f32.mrf.mxu1 }
 0x5f1   :  { %v704_v61 = vadd.f32 %v1435_v36, %v703_v60  ;;  %v823_v60 = vld [vmem:[#allocation2 + $0x38] sm:$0xf] }
 0x5f3   :  { %753 = vrot.lane.b32.xlu1 %v704_v61, %s1287_s18  ;;  %729 = vrot.lane.b32.xlu0 %v704_v61, %s1286_s17  ;;  %v707_v1 = vadd.f32 %v706_v0, %v704_v61 }
 0x5f5   :  { %v1108_v2 = vmul.f32 -1.442695, %v707_v1 }
 0x5f7   :  { %1198 = vpow2.f32 %v1108_v2 }
 0x5fb   :  { %773 = vperm.xlu0 %1141, %v770_v62  }
 0x5fd   :  { %v1199_v3 = vpop.eup %1198 }
 0x5fe   :  { %v711_v4 = vadd.f32 1.0, %v1199_v3  ;;  %v1593_v3 = vpop.f32.mrf.mxu0 }
 0x600   :  { %1200 = vrcp.f32 %v711_v4  ;;  %v723_v20 = vand.u32 2147483648, %v711_v4  ;;  %vm717_vm15 = vweird.f32 %v711_v4  ;;  %v721_v16 = vand.u32 2147483647, %v711_v4 }
 0x602   :  { %v724_v24 = vor.u32 1.1754944e-38, %v723_v20  ;;  %vm722_vm2 = vcmp.eq.f32.partialorder %v721_v16, 8.507059e+37 }
 0x603   :  { %862 = vperm.xlu0 %1141, %v1566_v63  }
 0x606   :  { %v1201_v5 = vpop.eup %1200  ;;  %v1016_v16 = vpop.f32.mrf.mxu0 }
 0x607   :  { %v713_v8 = vmul.f32 %v1201_v5, %v711_v4  ;;  %vm718_vm14 = vweird.f32 %v1201_v5 }
 0x608   :  { %vm719_vm1 = vmor %vm717_vm15, %vm718_vm14 }
 0x609   :  { %v714_v13 = vsub.f32 1.0, %v713_v8 }
 0x60b   :  { %v715_v17 = vmul.f32 %v1201_v5, %v714_v13 }
 0x60d   :  { %v716_v18 = vadd.f32 %v1201_v5, %v715_v17 }
 0x60f   :  { %v720_v22 = vsel %vm719_vm1, %v1201_v5, %v716_v18 }
 0x610   :  { %v725_v25 = vsel %vm722_vm2, %v724_v24, %v720_v22  ;;  %v848_v22 = vld [vmem:[#allocation2 + $0x58] sm:$0xf] }
 0x665   :  { %v730_v12 = vpop.permute.xlu0 %729  ;;  %v754_v23 = vpop.permute.xlu1 %753 }
 0x666   :  { %v732_v10 = vadd.f32 %v730_v12, %v727_v9  ;;  %v756_v6 = vmul.f32 %v754_v23, %v725_v25 }
 0x668   :  { %v1109_v15 = vmul.f32 -1.442695, %v732_v10  ;;  %v757_v27 = vadd.f32 %v756_v6, %v752_v11 }
 0x66a   :  { %1202 = vpow2.f32 %v1109_v15 }
 0x66d   :  { %v774_v32 = vpop.permute.xlu0 %773 }
 0x66e   :  { %v776_v46 = vmul.f32 %v774_v32, %v1553_v59 }
 0x670   :  { %v1203_v19 = vpop.eup %1202 }
 0x671   :  { %v736_v21 = vadd.f32 1.0, %v1203_v19 }
 0x673   :  { %1204 = vrcp.f32 %v736_v21  ;;  %v748_v30 = vand.u32 2147483648, %v736_v21  ;;  %v746_v34 = vand.u32 2147483647, %v736_v21  ;;  %vm742_vm4 = vweird.f32 %v736_v21 }
 0x674   :  { %1206 = vtanh.f32 %v757_v27 }
 0x675   :  { %v749_v37 = vor.u32 1.1754944e-38, %v748_v30  ;;  %vm747_vm6 = vcmp.eq.f32.partialorder %v746_v34, 8.507059e+37 }
 0x679   :  { %v1205_v26 = vpop.eup %1204 }
 0x67a   :  { %v738_v14 = vmul.f32 %v1205_v26, %v736_v21  ;;  %vm743_vm3 = vweird.f32 %v1205_v26  ;;  %v1207_v39 = vpop.eup %1206  ;;  %v1600_v21 = vld [vmem:[%s1662_s7] ss:$0 sm:$0xff] }
 0x67b   :  { %vm744_vm5 = vmor %vm742_vm4, %vm743_vm3  ;;  %v1017_v25 = vadd.f32 %v1600_v21, %v1016_v16 }
 0x67c   :  { %v739_v28 = vsub.f32 1.0, %v738_v14 }
 0x67e   :  { %v740_v33 = vmul.f32 %v1205_v26, %v739_v28 }
 0x680   :  { %v741_v35 = vadd.f32 %v1205_v26, %v740_v33 }
 0x682   :  { %v745_v38 = vsel %vm744_vm5, %v1205_v26, %v741_v35 }
 0x683   :  { %v750_v29 = vsel %vm747_vm6, %v749_v37, %v745_v38 }
 0x684   :  { %v759_v42 = vsub.f32 1.0, %v750_v29  ;;  %v761_v40 = vmul.f32 %v750_v29, %v1553_v59 }
 0x686   :  { %v760_v41 = vmul.f32 %v1207_v39, %v759_v42  ;;  %v863_v42 = vpop.permute.xlu0 %862 }
 0x688   :  { %v762_v43 = vadd.f32 %v761_v40, %v760_v41 }
 0x68a   :  { %v769_v45 = vmul.f32 %v767_v44, %v762_v43  ;;  %v1228_v43 = vld [vmem:[%s1660_s5] ss:$0 sm:$0xff] }
 0x68c   :  { %v1573_v47 = vadd.f32 %v776_v46, %v769_v45  ;;  %v962_v45 = vsub.f32 1.0, %v1587_v52  ;;  %v1025_v46 = vld [vmem:[%s1656_s1] sm:$0xff] }
 0x68e   :  { %778 = vst.msk [vmem:[#allocation3 + $0x14] sm:$0xf] %vm297_vm9, %v1573_v47  ;;  %1110 = vmatmul.msk.f32.vlgmr.msra.gmra.mxu2 %vm60_vm0, %v1573_v47 }
 0x695   :  { %v974_v48 = vld [vmem:[#allocation3 + $0x10] sm:$0xff] }
 0x696   :  { %1118 = vmatmul.msk.f32.gmra.mxu0 %vm60_vm0, %v974_v48  ;;  %v1027_v48 = vld [vmem:[%s1656_s1 + $0x10] sm:$0xff] }
 0x711   :  { %v799_v49 = vpop.f32.mrf.mxu2 }
 0x712   :  { %v800_v50 = vadd.f32 %v1435_v36, %v799_v49  ;;  %v802_v36 = vld [vmem:[#allocation2 + $0x18] sm:$0xf]  ;;  %v898_v49 = vld [vmem:[#allocation2 + $0x1c] sm:$0xf] }
 0x714   :  { %849 = vrot.lane.b32.xlu2 %v800_v50, %s1287_s18  ;;  %825 = vrot.lane.b32.xlu1 %v800_v50, %s1286_s17  ;;  %v803_v54 = vadd.f32 %v802_v36, %v800_v50  ;;  %v919_v36 = vld [vmem:[#allocation2 + $0x3c] sm:$0xf] }
 0x716   :  { %v1111_v55 = vmul.f32 -1.442695, %v803_v54 }
 0x718   :  { %1208 = vpow2.f32 %v1111_v55 }
 0x71c   :  { %869 = vperm.xlu1 %1140, %v866_v51  }
 0x71e   :  { %v1209_v56 = vpop.eup %1208 }
 0x71f   :  { %v807_v57 = vadd.f32 1.0, %v1209_v56 }
 0x721   :  { %1210 = vrcp.f32 %v807_v57  ;;  %v819_v8 = vand.u32 2147483648, %v807_v57  ;;  %vm813_vm8 = vweird.f32 %v807_v57  ;;  %v817_v9 = vand.u32 2147483647, %v807_v57 }
 0x723   :  { %v820_v15 = vor.u32 1.1754944e-38, %v819_v8  ;;  %vm818_vm11 = vcmp.eq.f32.partialorder %v817_v9, 8.507059e+37 }
 0x724   :  { %958 = vperm.xlu1 %1140, %v1587_v52  }
 0x727   :  { %v1211_v58 = vpop.eup %1210 }
 0x728   :  { %v809_v59 = vmul.f32 %v1211_v58, %v807_v57  ;;  %vm814_vm7 = vweird.f32 %v1211_v58 }
 0x729   :  { %vm815_vm10 = vmor %vm813_vm8, %vm814_vm7 }
 0x72a   :  { %v810_v63 = vsub.f32 1.0, %v809_v59 }
 0x72c   :  { %1036 = vperm.xlu1 %1140, %v1026_v53   ;;  %v811_v1 = vmul.f32 %v1211_v58, %v810_v63 }
 0x72e   :  { %v812_v4 = vadd.f32 %v1211_v58, %v811_v1 }
 0x730   :  { %v816_v10 = vsel %vm815_vm10, %v1211_v58, %v812_v4 }
 0x731   :  { %v821_v18 = vsel %vm818_vm11, %v820_v15, %v816_v10 }
 0x76e   :  { %v850_v13 = vpop.permute.xlu2 %849 }
 0x76f   :  { %v852_v19 = vmul.f32 %v850_v13, %v821_v18 }
 0x771   :  { %v853_v24 = vadd.f32 %v852_v19, %v848_v22 }
 0x786   :  { %v826_v61 = vpop.permute.xlu1 %825 }
 0x787   :  { %v828_v62 = vadd.f32 %v826_v61, %v823_v60 }
 0x789   :  { %v1112_v0 = vmul.f32 -1.442695, %v828_v62  ;;  %v1019_v62 = vpop.f32.mrf.mxu0 }
 0x78a   :  { %v1020_v1 = vadd.f32 %v1600_v21, %v1019_v62 }
 0x78b   :  { %1212 = vpow2.f32 %v1112_v0 }
 0x78e   :  { %v870_v2 = vpop.permute.xlu1 %869 }
 0x78f   :  { %v872_v40 = vmul.f32 %v870_v2, %v1573_v47 }
 0x791   :  { %v1213_v5 = vpop.eup %1212 }
 0x792   :  { %v832_v12 = vadd.f32 1.0, %v1213_v5 }
 0x794   :  { %1214 = vrcp.f32 %v832_v12  ;;  %v844_v6 = vand.u32 2147483648, %v832_v12  ;;  %v842_v11 = vand.u32 2147483647, %v832_v12  ;;  %vm838_vm14 = vweird.f32 %v832_v12 }
 0x795   :  { %1216 = vtanh.f32 %v853_v24  ;;  %v944_v24 = vld [vmem:[#allocation2 + $0x5c] sm:$0xf] }
 0x796   :  { %v1595_v17 = vpop.permute.xlu1 %958  ;;  %v845_v28 = vor.u32 1.1754944e-38, %v844_v6  ;;  %vm843_vm1 = vcmp.eq.f32.partialorder %v842_v11, 8.507059e+37  ;;  %v1014_v11 = vadd.f32 %v1600_v21, %v1593_v3 }
 0x79a   :  { %v1215_v20 = vpop.eup %1214 }
 0x79b   :  { %v834_v23 = vmul.f32 %v1215_v20, %v832_v12  ;;  %vm839_vm13 = vweird.f32 %v1215_v20  ;;  %v1217_v35 = vpop.eup %1216 }
 0x79c   :  { %vm840_vm15 = vmor %vm838_vm14, %vm839_vm13 }
 0x79d   :  { %v835_v31 = vsub.f32 1.0, %v834_v23 }
 0x79e   :  { %v1037_v7 = vpop.permute.xlu1 %1036 }
 0x79f   :  { %v836_v26 = vmul.f32 %v1215_v20, %v835_v31  ;;  %v1050_v14 = vmul.f32 %v1037_v7, %v1017_v25 }
 0x7a1   :  { %v837_v27 = vadd.f32 %v1215_v20, %v836_v26  ;;  %1055 = vst.msk [vmem:[%s1663_s8 + $0x8] sm:$0xff] %vm1053_vm12, %v1050_v14 }
 0x7a3   :  { %v841_v30 = vsel %vm840_vm15, %v1215_v20, %v837_v27 }
 0x7a4   :  { %v846_v33 = vsel %vm843_vm1, %v845_v28, %v841_v30 }
 0x7a5   :  { %v855_v34 = vsub.f32 1.0, %v846_v33  ;;  %v857_v37 = vmul.f32 %v846_v33, %v1573_v47  ;;  %v1028_v47 = vld [vmem:[%s1656_s1 + $0x18] sm:$0xff] }
 0x7a7   :  { %v856_v38 = vmul.f32 %v1217_v35, %v855_v34 }
 0x7a9   :  { %v858_v29 = vadd.f32 %v857_v37, %v856_v38 }
 0x7ab   :  { %v865_v39 = vmul.f32 %v863_v42, %v858_v29 }
 0x7ad   :  { %v1609_v41 = vadd.f32 %v872_v40, %v865_v39 }
 0x7af   :  { %874 = vst.msk [vmem:[#allocation3 + $0x18] sm:$0xf] %vm297_vm9, %v1609_v41  ;;  %1113 = vmatmul.msk.f32.vlgmr.msrb.gmra.mxu3 %vm60_vm0, %v1609_v41 }
 0x832   :  { %v895_v32 = vpop.f32.mrf.mxu3 }
 0x833   :  { %v896_v44 = vadd.f32 %v1228_v43, %v895_v32 }
 0x835   :  { %945 = vrot.lane.b32.xlu0 %v896_v44, %s1287_s18  ;;  %921 = vrot.lane.b32.xlu2 %v896_v44, %s1286_s17  ;;  %v899_v50 = vadd.f32 %v898_v49, %v896_v44 }
 0x837   :  { %v1114_v51 = vmul.f32 -1.442695, %v899_v50 }
 0x839   :  { %1218 = vpow2.f32 %v1114_v51 }
 0x83d   :  { %1031 = vperm.xlu0 %1141, %v1025_v46   ;;  %965 = vperm.xlu2 %1142, %v962_v45  }
 0x83f   :  { %v1219_v52 = vpop.eup %1218 }
 0x840   :  { %v903_v53 = vadd.f32 1.0, %v1219_v52 }
 0x842   :  { %1220 = vrcp.f32 %v903_v53  ;;  %v915_v8 = vand.u32 2147483648, %v903_v53  ;;  %vm909_vm3 = vweird.f32 %v903_v53  ;;  %v913_v9 = vand.u32 2147483647, %v903_v53 }
 0x844   :  { %v916_v15 = vor.u32 1.1754944e-38, %v915_v8  ;;  %vm914_vm5 = vcmp.eq.f32.partialorder %v913_v9, 8.507059e+37 }
 0x845   :  { %1046 = vperm.xlu0 %1141, %v1028_v47   ;;  %1041 = vperm.xlu2 %1142, %v1027_v48  }
 0x848   :  { %v1221_v56 = vpop.eup %1220 }
 0x849   :  { %v905_v58 = vmul.f32 %v1221_v56, %v903_v53  ;;  %vm910_vm2 = vweird.f32 %v1221_v56 }
 0x84a   :  { %vm911_vm4 = vmor %vm909_vm3, %vm910_vm2 }
 0x84b   :  { %v906_v60 = vsub.f32 1.0, %v905_v58 }
 0x84d   :  { %v907_v0 = vmul.f32 %v1221_v56, %v906_v60 }
 0x84f   :  { %v908_v5 = vadd.f32 %v1221_v56, %v907_v0 }
 0x851   :  { %v912_v13 = vsel %vm911_vm4, %v1221_v56, %v908_v5 }
 0x852   :  { %v917_v20 = vsel %vm914_vm5, %v916_v15, %v912_v13 }
 0x88f   :  { %v922_v54 = vpop.permute.xlu2 %921 }
 0x890   :  { %v924_v55 = vadd.f32 %v922_v54, %v919_v36 }
 0x892   :  { %v1115_v57 = vmul.f32 -1.442695, %v924_v55 }
 0x894   :  { %1222 = vpow2.f32 %v1115_v57 }
 0x897   :  { %v966_v59 = vpop.permute.xlu2 %965 }
 0x898   :  { %v968_v38 = vmul.f32 %v966_v59, %v1609_v41 }
 0x89a   :  { %v1223_v61 = vpop.eup %1222 }
 0x89b   :  { %v928_v63 = vadd.f32 1.0, %v1223_v61 }
 0x89d   :  { %1224 = vrcp.f32 %v928_v63  ;;  %v940_v22 = vand.u32 2147483648, %v928_v63  ;;  %v938_v25 = vand.u32 2147483647, %v928_v63  ;;  %vm934_vm7 = vweird.f32 %v928_v63 }
 0x89f   :  { %v1042_v2 = vpop.permute.xlu2 %1041  ;;  %v941_v7 = vor.u32 1.1754944e-38, %v940_v22  ;;  %vm939_vm10 = vcmp.eq.f32.partialorder %v938_v25, 8.507059e+37 }
 0x8a0   :  { %v1051_v4 = vmul.f32 %v1042_v2, %v1020_v1 }
 0x8a2   :  { %1056 = vst.msk [vmem:[%s1663_s8 + $0x10] sm:$0xff] %vm1053_vm12, %v1051_v4 }
 0x8a3   :  { %v1225_v12 = vpop.eup %1224 }
 0x8a4   :  { %v930_v10 = vmul.f32 %v1225_v12, %v928_v63  ;;  %vm935_vm6 = vweird.f32 %v1225_v12 }
 0x8a5   :  { %vm936_vm8 = vmor %vm934_vm7, %vm935_vm6 }
 0x8a6   :  { %v931_v18 = vsub.f32 1.0, %v930_v10 }
 0x8a7   :  { %v946_v19 = vpop.permute.xlu0 %945 }
 0x8a8   :  { %v932_v16 = vmul.f32 %v1225_v12, %v931_v18  ;;  %v948_v23 = vmul.f32 %v946_v19, %v917_v20 }
 0x8aa   :  { %v933_v31 = vadd.f32 %v1225_v12, %v932_v16  ;;  %v949_v6 = vadd.f32 %v948_v23, %v944_v24 }
 0x8ac   :  { %v937_v26 = vsel %vm936_vm8, %v1225_v12, %v933_v31  ;;  %1226 = vtanh.f32 %v949_v6 }
 0x8ad   :  { %v942_v14 = vsel %vm939_vm10, %v941_v7, %v937_v26 }
 0x8ae   :  { %v951_v30 = vsub.f32 1.0, %v942_v14  ;;  %v953_v35 = vmul.f32 %v942_v14, %v1609_v41 }
 0x8af   :  { %v1032_v27 = vpop.permute.xlu0 %1031 }
 0x8b0   :  { %v1049_v28 = vmul.f32 %v1032_v27, %v1014_v11 }
 0x8b2   :  { %v1227_v33 = vpop.eup %1226  ;;  %1054 = vst.msk [vmem:[%s1663_s8] sm:$0xff] %vm1053_vm12, %v1049_v28 }
 0x8b3   :  { %v952_v34 = vmul.f32 %v1227_v33, %v951_v30 }
 0x8b5   :  { %v954_v37 = vadd.f32 %v953_v35, %v952_v34 }
 0x8b7   :  { %v961_v29 = vmul.f32 %v1595_v17, %v954_v37  ;;  %v1047_v40 = vpop.permute.xlu0 %1046 }
 0x8b9   :  { %v969_v42 = vadd.f32 %v968_v38, %v961_v29 }
 0x8bb   :  { %970 = vst.msk [vmem:[#allocation3 + $0x1c] sm:$0xf] %vm297_vm9, %v969_v42 }
 0x8bc   :  { %971 = vst.msk [vmem:[#allocation7] sm:$0xf] %vm297_vm9, %v969_v42 }
 0x8bd   :  { %1070 = dma.vmem_to_hbm [thread:$0]  %s1066_s30, 64, %s1068_s10, [#allocation6]  }
 0x8c2   :  { %v975_v3 = vld [vmem:[#allocation3 + $0x18] sm:$0xff] }
 0x8c3   :  { %1119 = vmatmul.msk.f32.gmra.mxu0 %vm60_vm0, %v975_v3 }
 0x940   :  { %v1022_v39 = vpop.f32.mrf.mxu0 }
 0x941   :  { %v1023_v17 = vadd.f32 %v1600_v21, %v1022_v39 }
 0x943   :  { %v1052_v41 = vmul.f32 %v1047_v40, %v1023_v17 }
 0x945   :  { %1057 = vst.msk [vmem:[%s1663_s8 + $0x18] sm:$0xff] %vm1053_vm12, %v1052_v41 }
 0x946   :  { %1279 = dma.done.wait [#allocation6], 64  }
 0x947   :  { %1280 = vsyncadd [#allocation6], 4294967232 }
 0x948   :  { %1077 = vsyncpa [#allocation5], 1 }
 0x949   :  { %1078 = vsyncpa [#allocation6], 1 }

</bundles_post_ra>
